<compile_context>
chip_gen: v7x
topology: tpu7x:2x2x1
jax: 0.10.0
libtpu: 0.0.40
codegen_flags: <defaults>
</compile_context>

<pallas_src>
import functools

import numpy as np

import jax
import jax.numpy as jnp
from jax.experimental import pallas as pl
from jax.experimental.pallas import tpu as pltpu


# ----------------------------------------------------------------------------
# Model dimensions (synthetic teacher)
# ----------------------------------------------------------------------------
CIN, C1, C2 = 4, 8, 16
H = W = 16
H1, W1 = H // 2, W // 2          # 8, 8  after pool1
H2, W2 = H1 // 2, W1 // 2        # 4, 4  after pool2
NUM_CLASSES = 10

WPC1 = (W + 2) * CIN             # 72  padded-width * cin lanes, block 1
LC1 = W * C1                     # 128 conv1 output lanes, (w, c) fused
LP1 = W1 * C1                    # 64  pool1 output lanes
WPC2 = (W1 + 2) * C1             # 80
LC2 = W1 * C2                    # 128 conv2 output lanes
LP2 = W2 * C2                    # 64  pool2 output lanes


def _round_up(a, b):
    return ((a + b - 1) // b) * b


# ----------------------------------------------------------------------------
# Fused Pallas kernel: conv1+relu+pool1 -> conv2+relu+pool2 -> FC, per B-tile.
# Working layout: rows = (spatial h, batch) on the sublane/outer axes,
# lanes = (spatial w, channel) fused -> 72/80/128/64-lane dense operands.
# ----------------------------------------------------------------------------
def teacher_kernel(x_ref, w1_ref, b1_ref, s1_ref, w2_ref, b2_ref, s2_ref,
                   wfc_ref, bfc_ref,
                   act1_ref, act2_ref, logits_ref,
                   xpad1, c1s, xpad2, c2s):
    f32 = jnp.float32
    B = x_ref.shape[1]                         # batch-tile size (multiple of 8)

    # ---------------- Block 1: Conv3x3(CIN->C1) + ReLU -----------------------
    # Zero only the 1-pixel padding border (top/bottom rows, left/right lane
    # strips); the interior is fully overwritten every step -> no full memset.
    xpad1[0:1, :, :] = jnp.zeros((1, B, WPC1), f32)
    xpad1[H + 1:H + 2, :, :] = jnp.zeros((1, B, WPC1), f32)
    xpad1[:, :, 0:CIN] = jnp.zeros((H + 2, B, CIN), f32)
    xpad1[:, :, WPC1 - CIN:WPC1] = jnp.zeros((H + 2, B, CIN), f32)
    xpad1[1:H + 1, :, CIN:CIN + W * CIN] = x_ref[...]

    # The dx (width) tap shift is folded into the packed block-banded weights,
    # so the conv is 3 lane-dense MXU matmuls (one per dy row shift):
    #   (H*B, 72) @ (72, W*C1=128)
    y = jnp.dot(xpad1[0:H, :, :].reshape(H * B, WPC1), w1_ref[0],
                preferred_element_type=f32)
    for dy in range(1, 3):
        y = y + jnp.dot(xpad1[dy:dy + H, :, :].reshape(H * B, WPC1), w1_ref[dy],
                        preferred_element_type=f32)
    y = jnp.maximum(y + b1_ref[...], 0.0)                 # (H*B, 128)
    c1s[...] = y.reshape(H, B, LC1)

    # ---------------- MaxPool 2x2 (hooked activation #1) ---------------------
    # h direction: max of even/odd-h planes (leading-dim strided reads).
    rmax = jnp.maximum(c1s[pl.ds(0, H1, 2), :, :],
                       c1s[pl.ds(1, H1, 2), :, :]).reshape(H1 * B, LC1)
    # w direction: exact 0/1 lane-selection matmuls compact even/odd w groups
    # (essentially free on the otherwise idle MXU, no lane shuffles).
    p1 = jnp.maximum(jnp.dot(rmax, s1_ref[0], preferred_element_type=f32),
                     jnp.dot(rmax, s1_ref[1], preferred_element_type=f32))
    act1_ref[...] = p1.reshape(H1, B, LP1)                # (8, B, 64) dense-ish

    # ---------------- Block 2: Conv3x3(C1->C2) + ReLU -------------------------
    xpad2[0:1, :, :] = jnp.zeros((1, B, WPC2), f32)
    xpad2[H1 + 1:H1 + 2, :, :] = jnp.zeros((1, B, WPC2), f32)
    xpad2[:, :, 0:C1] = jnp.zeros((H1 + 2, B, C1), f32)
    xpad2[:, :, WPC2 - C1:WPC2] = jnp.zeros((H1 + 2, B, C1), f32)
    xpad2[1:H1 + 1, :, C1:C1 + W1 * C1] = p1.reshape(H1, B, LP1)

    y = jnp.dot(xpad2[0:H1, :, :].reshape(H1 * B, WPC2), w2_ref[0],
                preferred_element_type=f32)
    for dy in range(1, 3):
        y = y + jnp.dot(xpad2[dy:dy + H1, :, :].reshape(H1 * B, WPC2), w2_ref[dy],
                        preferred_element_type=f32)
    y = jnp.maximum(y + b2_ref[...], 0.0)                 # (H1*B, 128)
    c2s[...] = y.reshape(H1, B, LC2)

    # ---------------- MaxPool 2x2 (hooked activation #2) ---------------------
    rmax2 = jnp.maximum(c2s[pl.ds(0, H2, 2), :, :],
                        c2s[pl.ds(1, H2, 2), :, :]).reshape(H2 * B, LC2)
    p2 = jnp.maximum(jnp.dot(rmax2, s2_ref[0], preferred_element_type=f32),
                     jnp.dot(rmax2, s2_ref[1], preferred_element_type=f32))
    act2_ref[...] = p2.reshape(H2, B, LP2)                # (4, B, 64)

    # ---------------- Classifier: Linear(C2*H2*W2 -> NUM_CLASSES) ------------
    # NCHW-flatten semantics preserved via the one-time weight repack; one dot
    # with M=B per pooled row h2 (4 total) -- no serial M=1 chain.
    p2_3d = p2.reshape(H2, B, LP2)
    acc = jnp.dot(p2_3d[0], wfc_ref[0], preferred_element_type=f32)
    for h2 in range(1, H2):
        acc = acc + jnp.dot(p2_3d[h2], wfc_ref[h2], preferred_element_type=f32)
    logits_ref[...] = acc + bfc_ref[...]


# ----------------------------------------------------------------------------
# pallas_call wrapper: grid over batch tiles (B images per step, parallel)
# ----------------------------------------------------------------------------
def make_teacher_call(bt, n_pad):
    f32 = jnp.float32
    out_shape = (
        jax.ShapeDtypeStruct((H1, n_pad, LP1), f32),        # act1 (h1, n, w1*c)
        jax.ShapeDtypeStruct((H2, n_pad, LP2), f32),        # act2 (h2, n, w2*c)
        jax.ShapeDtypeStruct((n_pad, NUM_CLASSES), f32),    # logits
    )
    in_specs = [
        pl.BlockSpec((H, bt, W * CIN), lambda i: (0, i, 0)),            # x
        pl.BlockSpec((3, WPC1, LC1), lambda i: (0, 0, 0)),              # w1 packed
        pl.BlockSpec((1, LC1), lambda i: (0, 0)),                       # b1 row
        pl.BlockSpec((2, LC1, LP1), lambda i: (0, 0, 0)),               # pool1 sel
        pl.BlockSpec((3, WPC2, LC2), lambda i: (0, 0, 0)),              # w2 packed
        pl.BlockSpec((1, LC2), lambda i: (0, 0)),                       # b2 row
        pl.BlockSpec((2, LC2, LP2), lambda i: (0, 0, 0)),               # pool2 sel
        pl.BlockSpec((H2, LP2, NUM_CLASSES), lambda i: (0, 0, 0)),      # wfc packed
        pl.BlockSpec((1, NUM_CLASSES), lambda i: (0, 0)),               # bfc
    ]
    out_specs = (
        pl.BlockSpec((H1, bt, LP1), lambda i: (0, i, 0)),
        pl.BlockSpec((H2, bt, LP2), lambda i: (0, i, 0)),
        pl.BlockSpec((bt, NUM_CLASSES), lambda i: (i, 0)),
    )
    scratch_shapes = [
        pltpu.VMEM((H + 2, bt, WPC1), f32),     # padded conv1 input (18, B, 72)
        pltpu.VMEM((H, bt, LC1), f32),          # conv1+relu output  (16, B, 128)
        pltpu.VMEM((H1 + 2, bt, WPC2), f32),    # padded conv2 input (10, B, 80)
        pltpu.VMEM((H1, bt, LC2), f32),         # conv2+relu output  (8, B, 128)
    ]
    return pl.pallas_call(
        teacher_kernel,
        out_shape=out_shape,
        grid=(n_pad // bt,),
        in_specs=in_specs,
        out_specs=out_specs,
        scratch_shapes=scratch_shapes,
        compiler_params=pltpu.CompilerParams(
            dimension_semantics=("parallel",)),
    )


# ----------------------------------------------------------------------------
# Teacher forward (hooks on every MaxPool2d output, PyTorch NCHW at the API)
# ----------------------------------------------------------------------------
def teacher_forward(params, x_nchw, is_feat=False, batch_tile=64):
    n = x_nchw.shape[0]
    # NCHW (PyTorch convention) -> (H, batch, W*CIN) lane-fused kernel layout.
    x = jnp.transpose(x_nchw, (0, 2, 3, 1)).astype(jnp.float32)
    x = x.reshape(n, H, W * CIN)
    bt = max(8, min(_round_up(batch_tile, 8), _round_up(n, 8)))
    n_pad = _round_up(n, bt)
    if n_pad != n:
        x = jnp.pad(x, ((0, n_pad - n), (0, 0), (0, 0)))
    xt = jnp.transpose(x, (1, 0, 2))                       # (H, n_pad, W*CIN)

    act1_raw, act2_raw, logits_raw = make_teacher_call(bt, n_pad)(
        xt, params["w1p"], params["b1row"], params["s1"],
        params["w2p"], params["b2row"], params["s2"],
        params["wfcp"], params["bfcrow"])

    logits = logits_raw[:n]
    # TODO(synk): PyTorch forward-hook registration / isinstance(model, VGG|ResNet)
    # dispatch has no JAX equivalent; the MaxPool2d hook outputs are returned
    # explicitly instead.
    if is_feat:
        # Hook outputs are NCHW in PyTorch; these are tiny boundary transposes.
        a1 = act1_raw[:, :n, :].reshape(H1, n, W1, C1).transpose(1, 3, 0, 2)
        a2 = act2_raw[:, :n, :].reshape(H2, n, W2, C2).transpose(1, 3, 0, 2)
        return [a1, a2], logits
    return logits


# ----------------------------------------------------------------------------
# Deterministic parameter init (synthetic teacher) + one-time kernel packing
# ----------------------------------------------------------------------------
def init_params(key):
    k1, k2, k3, k4, k5, k6 = jax.random.split(key, 6)
    feat_dim = C2 * H2 * W2
    return {
        "w1": 0.1 * jax.random.normal(k1, (3, 3, CIN, C1), jnp.float32),
        "b1": 0.05 * jax.random.normal(k4, (C1,), jnp.float32),
        "w2": 0.1 * jax.random.normal(k2, (3, 3, C1, C2), jnp.float32),
        "b2": 0.05 * jax.random.normal(k5, (C2,), jnp.float32),
        "wfc": 0.1 * jax.random.normal(k3, (feat_dim, NUM_CLASSES), jnp.float32),
        "bfc": 0.05 * jax.random.normal(k6, (NUM_CLASSES,), jnp.float32),
    }


def pack_params(p):
    """One-time repack into the kernel's lane-dense, shift-folded layout."""
    w1 = np.asarray(p["w1"], np.float32)    # (3, 3, CIN, C1)  HWIO
    w2 = np.asarray(p["w2"], np.float32)    # (3, 3, C1, C2)
    wfc = np.asarray(p["wfc"], np.float32)  # (C2*H2*W2, K) NCHW-flatten rows

    # Conv weights: fold the dx (width) tap shift into a block-banded matrix:
    #   Wp[dy][(w+dx)*Cin + ci, w*Cout + co] = K[dy, dx, ci, co]
    w1p = np.zeros((3, WPC1, LC1), np.float32)
    for dy in range(3):
        for dx in range(3):
            for w in range(W):
                w1p[dy, (w + dx) * CIN:(w + dx + 1) * CIN,
                    w * C1:(w + 1) * C1] = w1[dy, dx]
    w2p = np.zeros((3, WPC2, LC2), np.float32)
    for dy in range(3):
        for dx in range(3):
            for w in range(W1):
                w2p[dy, (w + dx) * C1:(w + dx + 1) * C1,
                    w * C2:(w + 1) * C2] = w2[dy, dx]

    # Exact 0/1 selection matrices: compact even/odd pooled columns (w, c fused
    # on lanes) with a tiny MXU matmul instead of lane shuffles.
    s1 = np.zeros((2, LC1, LP1), np.float32)
    for par in range(2):
        for wo in range(W1):
            for c in range(C1):
                s1[par, (2 * wo + par) * C1 + c, wo * C1 + c] = 1.0
    s2 = np.zeros((2, LC2, LP2), np.float32)
    for par in range(2):
        for wo in range(W2):
            for c in range(C2):
                s2[par, (2 * wo + par) * C2 + c, wo * C2 + c] = 1.0

    # FC rows are NCHW-flatten features (c*H2*W2 + h2*W2 + w2); repack to
    # [h2, w2*C2 + c, class] to match the kernel's (h2-row, (w2,c)-lane) layout.
    wfcp = np.zeros((H2, LP2, NUM_CLASSES), np.float32)
    for c in range(C2):
        for h2 in range(H2):
            for w2_ in range(W2):
                wfcp[h2, w2_ * C2 + c, :] = wfc[c * H2 * W2 + h2 * W2 + w2_, :]

    b1row = np.tile(np.asarray(p["b1"], np.float32), W).reshape(1, LC1)
    b2row = np.tile(np.asarray(p["b2"], np.float32), W1).reshape(1, LC2)
    bfcrow = np.asarray(p["bfc"], np.float32).reshape(1, NUM_CLASSES)

    return {
        "w1p": jnp.asarray(w1p), "b1row": jnp.asarray(b1row), "s1": jnp.asarray(s1),
        "w2p": jnp.asarray(w2p), "b2row": jnp.asarray(b2row), "s2": jnp.asarray(s2),
        "wfcp": jnp.asarray(wfcp), "bfcrow": jnp.asarray(bfcrow),
    }


# ----------------------------------------------------------------------------
# Pure-JAX (XLA) reference of the same synthetic teacher, for a numerics check
# ----------------------------------------------------------------------------
def reference_forward(raw, x_nchw):
    dn = ("NHWC", "HWIO", "NHWC")
    hp = jax.lax.Precision.HIGHEST
    x = jnp.transpose(x_nchw, (0, 2, 3, 1)).astype(jnp.float32)
    y = jax.lax.conv_general_dilated(x, raw["w1"], (1, 1), ((1, 1), (1, 1)),
                                     dimension_numbers=dn, precision=hp)
    y = jnp.maximum(y + raw["b1"], 0.0)
    a1 = jax.lax.reduce_window(y, -jnp.inf, jax.lax.max,
                               (1, 2, 2, 1), (1, 2, 2, 1), "VALID")
    y = jax.lax.conv_general_dilated(a1, raw["w2"], (1, 1), ((1, 1), (1, 1)),
                                     dimension_numbers=dn, precision=hp)
    y = jnp.maximum(y + raw["b2"], 0.0)
    a2 = jax.lax.reduce_window(y, -jnp.inf, jax.lax.max,
                               (1, 2, 2, 1), (1, 2, 2, 1), "VALID")
    a1_nchw = jnp.transpose(a1, (0, 3, 1, 2))
    a2_nchw = jnp.transpose(a2, (0, 3, 1, 2))
    feat = a2_nchw.reshape(a2_nchw.shape[0], -1)           # NCHW flatten
    logits = jnp.dot(feat, raw["wfc"], precision=hp) + raw["bfc"]
    return [a1_nchw, a2_nchw], logits


if __name__ == "__main__":
    key = jax.random.PRNGKey(0)
    pkey, xkey = jax.random.split(key)
    raw = init_params(pkey)
    params = pack_params(raw)

    # x in PyTorch NCHW convention: (batch=2, channels=4, 16, 16)
    x = jax.random.normal(xkey, (2, CIN, H, W), jnp.float32)

    fwd = jax.jit(functools.partial(teacher_forward, is_feat=True))
    activations, logits = fwd(params, x)
    logits = jax.block_until_ready(logits)
    activations = [jax.block_until_ready(a) for a in activations]

    assert logits.shape == (2, NUM_CLASSES)
    assert activations[0].shape == (2, C1, H1, W1)          # NCHW: (2, 8, 8, 8)
    assert activations[1].shape == (2, C2, H2, W2)          # NCHW: (2, 16, 4, 4)
    assert all(bool(jnp.all(jnp.isfinite(a))) for a in activations)
    assert bool(jnp.all(jnp.isfinite(logits)))

    # Numerics check vs. the XLA reference (tolerance covers MXU f32 rounding).
    ref_acts, ref_logits = reference_forward(raw, x)
    np.testing.assert_allclose(np.asarray(logits), np.asarray(ref_logits),
                               rtol=3e-2, atol=3e-2)
    for a, r in zip(activations, ref_acts):
        np.testing.assert_allclose(np.asarray(a), np.asarray(r),
                                   rtol=3e-2, atol=3e-2)

    print("KERNEL_OK")
</pallas_src>

<mosaic_0001>
module attributes {stable_mosaic.version = 11 : i64} {
  func.func @teacher_kernel(%arg0: i32, %arg1: memref<16x8x64xf32, #tpu.memory_space<vmem>>, %arg2: memref<3x72x128xf32, #tpu.memory_space<vmem>>, %arg3: memref<1x128xf32, #tpu.memory_space<vmem>>, %arg4: memref<2x128x64xf32, #tpu.memory_space<vmem>>, %arg5: memref<3x80x128xf32, #tpu.memory_space<vmem>>, %arg6: memref<1x128xf32, #tpu.memory_space<vmem>>, %arg7: memref<2x128x64xf32, #tpu.memory_space<vmem>>, %arg8: memref<4x64x10xf32, #tpu.memory_space<vmem>>, %arg9: memref<1x10xf32, #tpu.memory_space<vmem>>, %arg10: memref<8x8x64xf32, #tpu.memory_space<vmem>>, %arg11: memref<4x8x64xf32, #tpu.memory_space<vmem>>, %arg12: memref<8x10xf32, #tpu.memory_space<vmem>>, %arg13: memref<18x8x72xf32, #tpu.memory_space<vmem>>, %arg14: memref<16x8x128xf32, #tpu.memory_space<vmem>>, %arg15: memref<10x8x80xf32, #tpu.memory_space<vmem>>, %arg16: memref<8x8x128xf32, #tpu.memory_space<vmem>>) attributes {dimension_semantics = [#tpu.dimension_semantics<parallel>], iteration_bounds = array<i64: 1>, scalar_prefetch = 0 : i64, scratch_operands = 4 : i64, tpu.core_type = #tpu.core_type<tc>, window_params = [{transform_indices = @transform_0, window_bounds = array<i64: 16, 8, 64>}, {pipeline_mode = #tpu.pipeline_mode<synchronous>, transform_indices = @transform_1, window_bounds = array<i64: 3, 72, 128>}, {pipeline_mode = #tpu.pipeline_mode<synchronous>, transform_indices = @transform_2, window_bounds = array<i64: 1, 128>}, {pipeline_mode = #tpu.pipeline_mode<synchronous>, transform_indices = @transform_3, window_bounds = array<i64: 2, 128, 64>}, {pipeline_mode = #tpu.pipeline_mode<synchronous>, transform_indices = @transform_4, window_bounds = array<i64: 3, 80, 128>}, {pipeline_mode = #tpu.pipeline_mode<synchronous>, transform_indices = @transform_5, window_bounds = array<i64: 1, 128>}, {pipeline_mode = #tpu.pipeline_mode<synchronous>, transform_indices = @transform_6, window_bounds = array<i64: 2, 128, 64>}, {pipeline_mode = #tpu.pipeline_mode<synchronous>, transform_indices = @transform_7, window_bounds = array<i64: 4, 64, 10>}, {pipeline_mode = #tpu.pipeline_mode<synchronous>, transform_indices = @transform_8, window_bounds = array<i64: 1, 10>}, {transform_indices = @transform_9, window_bounds = array<i64: 8, 8, 64>}, {transform_indices = @transform_10, window_bounds = array<i64: 4, 8, 64>}, {transform_indices = @transform_11, window_bounds = array<i64: 8, 10>}]} {
    %cst = arith.constant 0.000000e+00 : f32
    %0 = vector.broadcast %cst : f32 to vector<1x8x72xf32>
    %c0 = arith.constant 0 : index
    %c0_0 = arith.constant 0 : index
    %c0_1 = arith.constant 0 : index
    %1 = vector.load %arg13[%c0, %c0_0, %c0_1] : memref<18x8x72xf32, #tpu.memory_space<vmem>>, vector<1x8x72xf32>
    tpu.vector_store %arg13[%c0, %c0_0, %c0_1], %0 {strides = array<i32>} : memref<18x8x72xf32, #tpu.memory_space<vmem>>, vector<1x8x72xf32>,
    %cst_2 = arith.constant 0.000000e+00 : f32
    %2 = vector.broadcast %cst_2 : f32 to vector<1x8x72xf32>
    %c17 = arith.constant 17 : index
    %c0_3 = arith.constant 0 : index
    %c0_4 = arith.constant 0 : index
    %3 = vector.load %arg13[%c17, %c0_3, %c0_4] : memref<18x8x72xf32, #tpu.memory_space<vmem>>, vector<1x8x72xf32>
    tpu.vector_store %arg13[%c17, %c0_3, %c0_4], %2 {strides = array<i32>} : memref<18x8x72xf32, #tpu.memory_space<vmem>>, vector<1x8x72xf32>,
    %cst_5 = arith.constant 0.000000e+00 : f32
    %4 = vector.broadcast %cst_5 : f32 to vector<18x8x4xf32>
    %c0_6 = arith.constant 0 : index
    %c0_7 = arith.constant 0 : index
    %c0_8 = arith.constant 0 : index
    %5 = vector.load %arg13[%c0_6, %c0_7, %c0_8] : memref<18x8x72xf32, #tpu.memory_space<vmem>>, vector<18x8x4xf32>
    tpu.vector_store %arg13[%c0_6, %c0_7, %c0_8], %4 {strides = array<i32>} : memref<18x8x72xf32, #tpu.memory_space<vmem>>, vector<18x8x4xf32>,
    %cst_9 = arith.constant 0.000000e+00 : f32
    %6 = vector.broadcast %cst_9 : f32 to vector<18x8x4xf32>
    %c0_10 = arith.constant 0 : index
    %c0_11 = arith.constant 0 : index
    %c68 = arith.constant 68 : index
    %7 = vector.load %arg13[%c0_10, %c0_11, %c68] : memref<18x8x72xf32, #tpu.memory_space<vmem>>, vector<18x8x4xf32>
    tpu.vector_store %arg13[%c0_10, %c0_11, %c68], %6 {strides = array<i32>} : memref<18x8x72xf32, #tpu.memory_space<vmem>>, vector<18x8x4xf32>,
    %c0_12 = arith.constant 0 : index
    %c0_13 = arith.constant 0 : index
    %c0_14 = arith.constant 0 : index
    %8 = vector.load %arg1[%c0_12, %c0_13, %c0_14] : memref<16x8x64xf32, #tpu.memory_space<vmem>>, vector<16x8x64xf32>
    %c1 = arith.constant 1 : index
    %c0_15 = arith.constant 0 : index
    %c4 = arith.constant 4 : index
    %9 = vector.load %arg13[%c1, %c0_15, %c4] : memref<18x8x72xf32, #tpu.memory_space<vmem>>, vector<16x8x64xf32>
    tpu.vector_store %arg13[%c1, %c0_15, %c4], %8 {strides = array<i32>} : memref<18x8x72xf32, #tpu.memory_space<vmem>>, vector<16x8x64xf32>,
    %c0_16 = arith.constant 0 : index
    %c0_17 = arith.constant 0 : index
    %c0_18 = arith.constant 0 : index
    %10 = vector.load %arg13[%c0_16, %c0_17, %c0_18] : memref<18x8x72xf32, #tpu.memory_space<vmem>>, vector<16x8x72xf32>
    %11 = vector.shape_cast %10 : vector<16x8x72xf32> to vector<128x72xf32>
    %c0_19 = arith.constant 0 : index
    %c0_20 = arith.constant 0 : index
    %c0_21 = arith.constant 0 : index
    %12 = vector.load %arg2[%c0_19, %c0_20, %c0_21] : memref<3x72x128xf32, #tpu.memory_space<vmem>>, vector<1x72x128xf32>
    %13 = vector.shape_cast %12 : vector<1x72x128xf32> to vector<72x128xf32>
    %cst_22 = arith.constant dense<0.000000e+00> : vector<128x128xf32>
    %14 = tpu.matmul %11, %13, %cst_22 {dimension_numbers = #tpu.dot_dimension_numbers<[1], [0], [0], [1], [0, 0, 1, 1], [], []>} : vector<128x72xf32>, vector<72x128xf32>, vector<128x128xf32> -> vector<128x128xf32>
    %c1_23 = arith.constant 1 : index
    %c0_24 = arith.constant 0 : index
    %c0_25 = arith.constant 0 : index
    %15 = vector.load %arg13[%c1_23, %c0_24, %c0_25] : memref<18x8x72xf32, #tpu.memory_space<vmem>>, vector<16x8x72xf32>
    %16 = vector.shape_cast %15 : vector<16x8x72xf32> to vector<128x72xf32>
    %c1_26 = arith.constant 1 : index
    %c0_27 = arith.constant 0 : index
    %c0_28 = arith.constant 0 : index
    %17 = vector.load %arg2[%c1_26, %c0_27, %c0_28] : memref<3x72x128xf32, #tpu.memory_space<vmem>>, vector<1x72x128xf32>
    %18 = vector.shape_cast %17 : vector<1x72x128xf32> to vector<72x128xf32>
    %cst_29 = arith.constant dense<0.000000e+00> : vector<128x128xf32>
    %19 = tpu.matmul %16, %18, %cst_29 {dimension_numbers = #tpu.dot_dimension_numbers<[1], [0], [0], [1], [0, 0, 1, 1], [], []>} : vector<128x72xf32>, vector<72x128xf32>, vector<128x128xf32> -> vector<128x128xf32>
    %20 = arith.addf %14, %19 : vector<128x128xf32>
    %c2 = arith.constant 2 : index
    %c0_30 = arith.constant 0 : index
    %c0_31 = arith.constant 0 : index
    %21 = vector.load %arg13[%c2, %c0_30, %c0_31] : memref<18x8x72xf32, #tpu.memory_space<vmem>>, vector<16x8x72xf32>
    %22 = vector.shape_cast %21 : vector<16x8x72xf32> to vector<128x72xf32>
    %c2_32 = arith.constant 2 : index
    %c0_33 = arith.constant 0 : index
    %c0_34 = arith.constant 0 : index
    %23 = vector.load %arg2[%c2_32, %c0_33, %c0_34] : memref<3x72x128xf32, #tpu.memory_space<vmem>>, vector<1x72x128xf32>
    %24 = vector.shape_cast %23 : vector<1x72x128xf32> to vector<72x128xf32>
    %cst_35 = arith.constant dense<0.000000e+00> : vector<128x128xf32>
    %25 = tpu.matmul %22, %24, %cst_35 {dimension_numbers = #tpu.dot_dimension_numbers<[1], [0], [0], [1], [0, 0, 1, 1], [], []>} : vector<128x72xf32>, vector<72x128xf32>, vector<128x128xf32> -> vector<128x128xf32>
    %26 = arith.addf %20, %25 : vector<128x128xf32>
    %c0_36 = arith.constant 0 : index
    %c0_37 = arith.constant 0 : index
    %27 = vector.load %arg3[%c0_36, %c0_37] : memref<1x128xf32, #tpu.memory_space<vmem>>, vector<1x128xf32>
    %28 = vector.broadcast %27 : vector<1x128xf32> to vector<128x128xf32>
    %29 = arith.addf %26, %28 : vector<128x128xf32>
    %cst_38 = arith.constant 0.000000e+00 : f32
    %30 = vector.broadcast %cst_38 : f32 to vector<128x128xf32>
    %31 = arith.maximumf %29, %30 : vector<128x128xf32>
    %32 = vector.shape_cast %31 : vector<128x128xf32> to vector<16x8x128xf32>
    %c0_39 = arith.constant 0 : index
    %c0_40 = arith.constant 0 : index
    %c0_41 = arith.constant 0 : index
    %33 = vector.load %arg14[%c0_39, %c0_40, %c0_41] : memref<16x8x128xf32, #tpu.memory_space<vmem>>, vector<16x8x128xf32>
    tpu.vector_store %arg14[%c0_39, %c0_40, %c0_41], %32 {strides = array<i32>} : memref<16x8x128xf32, #tpu.memory_space<vmem>>, vector<16x8x128xf32>,
    %c0_42 = arith.constant 0 : index
    %c0_43 = arith.constant 0 : index
    %c0_44 = arith.constant 0 : index
    %34 = tpu.strided_load %arg14[%c0_42, %c0_43, %c0_44] {strides = array<i32: 2, 1, 1>} : memref<16x8x128xf32, #tpu.memory_space<vmem>>, vector<8x8x128xf32>
    %c1_45 = arith.constant 1 : index
    %c0_46 = arith.constant 0 : index
    %c0_47 = arith.constant 0 : index
    %35 = tpu.strided_load %arg14[%c1_45, %c0_46, %c0_47] {strides = array<i32: 2, 1, 1>} : memref<16x8x128xf32, #tpu.memory_space<vmem>>, vector<8x8x128xf32>
    %36 = arith.maximumf %34, %35 : vector<8x8x128xf32>
    %37 = vector.shape_cast %36 : vector<8x8x128xf32> to vector<64x128xf32>
    %c0_48 = arith.constant 0 : index
    %c0_49 = arith.constant 0 : index
    %c0_50 = arith.constant 0 : index
    %38 = vector.load %arg4[%c0_48, %c0_49, %c0_50] : memref<2x128x64xf32, #tpu.memory_space<vmem>>, vector<1x128x64xf32>
    %39 = vector.shape_cast %38 : vector<1x128x64xf32> to vector<128x64xf32>
    %cst_51 = arith.constant dense<0.000000e+00> : vector<64x64xf32>
    %40 = tpu.matmul %37, %39, %cst_51 {dimension_numbers = #tpu.dot_dimension_numbers<[1], [0], [0], [1], [0, 0, 1, 1], [], []>} : vector<64x128xf32>, vector<128x64xf32>, vector<64x64xf32> -> vector<64x64xf32>
    %c1_52 = arith.constant 1 : index
    %c0_53 = arith.constant 0 : index
    %c0_54 = arith.constant 0 : index
    %41 = vector.load %arg4[%c1_52, %c0_53, %c0_54] : memref<2x128x64xf32, #tpu.memory_space<vmem>>, vector<1x128x64xf32>
    %42 = vector.shape_cast %41 : vector<1x128x64xf32> to vector<128x64xf32>
    %cst_55 = arith.constant dense<0.000000e+00> : vector<64x64xf32>
    %43 = tpu.matmul %37, %42, %cst_55 {dimension_numbers = #tpu.dot_dimension_numbers<[1], [0], [0], [1], [0, 0, 1, 1], [], []>} : vector<64x128xf32>, vector<128x64xf32>, vector<64x64xf32> -> vector<64x64xf32>
    %44 = arith.maximumf %40, %43 : vector<64x64xf32>
    %45 = vector.shape_cast %44 : vector<64x64xf32> to vector<8x8x64xf32>
    %c0_56 = arith.constant 0 : index
    %c0_57 = arith.constant 0 : index
    %c0_58 = arith.constant 0 : index
    %46 = vector.load %arg10[%c0_56, %c0_57, %c0_58] : memref<8x8x64xf32, #tpu.memory_space<vmem>>, vector<8x8x64xf32>
    tpu.vector_store %arg10[%c0_56, %c0_57, %c0_58], %45 {strides = array<i32>} : memref<8x8x64xf32, #tpu.memory_space<vmem>>, vector<8x8x64xf32>,
    %cst_59 = arith.constant 0.000000e+00 : f32
    %47 = vector.broadcast %cst_59 : f32 to vector<1x8x80xf32>
    %c0_60 = arith.constant 0 : index
    %c0_61 = arith.constant 0 : index
    %c0_62 = arith.constant 0 : index
    %48 = vector.load %arg15[%c0_60, %c0_61, %c0_62] : memref<10x8x80xf32, #tpu.memory_space<vmem>>, vector<1x8x80xf32>
    tpu.vector_store %arg15[%c0_60, %c0_61, %c0_62], %47 {strides = array<i32>} : memref<10x8x80xf32, #tpu.memory_space<vmem>>, vector<1x8x80xf32>,
    %cst_63 = arith.constant 0.000000e+00 : f32
    %49 = vector.broadcast %cst_63 : f32 to vector<1x8x80xf32>
    %c9 = arith.constant 9 : index
    %c0_64 = arith.constant 0 : index
    %c0_65 = arith.constant 0 : index
    %50 = vector.load %arg15[%c9, %c0_64, %c0_65] : memref<10x8x80xf32, #tpu.memory_space<vmem>>, vector<1x8x80xf32>
    tpu.vector_store %arg15[%c9, %c0_64, %c0_65], %49 {strides = array<i32>} : memref<10x8x80xf32, #tpu.memory_space<vmem>>, vector<1x8x80xf32>,
    %cst_66 = arith.constant 0.000000e+00 : f32
    %51 = vector.broadcast %cst_66 : f32 to vector<10x8x8xf32>
    %c0_67 = arith.constant 0 : index
    %c0_68 = arith.constant 0 : index
    %c0_69 = arith.constant 0 : index
    %52 = vector.load %arg15[%c0_67, %c0_68, %c0_69] : memref<10x8x80xf32, #tpu.memory_space<vmem>>, vector<10x8x8xf32>
    tpu.vector_store %arg15[%c0_67, %c0_68, %c0_69], %51 {strides = array<i32>} : memref<10x8x80xf32, #tpu.memory_space<vmem>>, vector<10x8x8xf32>,
    %cst_70 = arith.constant 0.000000e+00 : f32
    %53 = vector.broadcast %cst_70 : f32 to vector<10x8x8xf32>
    %c0_71 = arith.constant 0 : index
    %c0_72 = arith.constant 0 : index
    %c72 = arith.constant 72 : index
    %54 = vector.load %arg15[%c0_71, %c0_72, %c72] : memref<10x8x80xf32, #tpu.memory_space<vmem>>, vector<10x8x8xf32>
    tpu.vector_store %arg15[%c0_71, %c0_72, %c72], %53 {strides = array<i32>} : memref<10x8x80xf32, #tpu.memory_space<vmem>>, vector<10x8x8xf32>,
    %55 = vector.shape_cast %44 : vector<64x64xf32> to vector<8x8x64xf32>
    %c1_73 = arith.constant 1 : index
    %c0_74 = arith.constant 0 : index
    %c8 = arith.constant 8 : index
    %56 = vector.load %arg15[%c1_73, %c0_74, %c8] : memref<10x8x80xf32, #tpu.memory_space<vmem>>, vector<8x8x64xf32>
    tpu.vector_store %arg15[%c1_73, %c0_74, %c8], %55 {strides = array<i32>} : memref<10x8x80xf32, #tpu.memory_space<vmem>>, vector<8x8x64xf32>,
    %c0_75 = arith.constant 0 : index
    %c0_76 = arith.constant 0 : index
    %c0_77 = arith.constant 0 : index
    %57 = vector.load %arg15[%c0_75, %c0_76, %c0_77] : memref<10x8x80xf32, #tpu.memory_space<vmem>>, vector<8x8x80xf32>
    %58 = vector.shape_cast %57 : vector<8x8x80xf32> to vector<64x80xf32>
    %c0_78 = arith.constant 0 : index
    %c0_79 = arith.constant 0 : index
    %c0_80 = arith.constant 0 : index
    %59 = vector.load %arg5[%c0_78, %c0_79, %c0_80] : memref<3x80x128xf32, #tpu.memory_space<vmem>>, vector<1x80x128xf32>
    %60 = vector.shape_cast %59 : vector<1x80x128xf32> to vector<80x128xf32>
    %cst_81 = arith.constant dense<0.000000e+00> : vector<64x128xf32>
    %61 = tpu.matmul %58, %60, %cst_81 {dimension_numbers = #tpu.dot_dimension_numbers<[1], [0], [0], [1], [0, 0, 1, 1], [], []>} : vector<64x80xf32>, vector<80x128xf32>, vector<64x128xf32> -> vector<64x128xf32>
    %c1_82 = arith.constant 1 : index
    %c0_83 = arith.constant 0 : index
    %c0_84 = arith.constant 0 : index
    %62 = vector.load %arg15[%c1_82, %c0_83, %c0_84] : memref<10x8x80xf32, #tpu.memory_space<vmem>>, vector<8x8x80xf32>
    %63 = vector.shape_cast %62 : vector<8x8x80xf32> to vector<64x80xf32>
    %c1_85 = arith.constant 1 : index
    %c0_86 = arith.constant 0 : index
    %c0_87 = arith.constant 0 : index
    %64 = vector.load %arg5[%c1_85, %c0_86, %c0_87] : memref<3x80x128xf32, #tpu.memory_space<vmem>>, vector<1x80x128xf32>
    %65 = vector.shape_cast %64 : vector<1x80x128xf32> to vector<80x128xf32>
    %cst_88 = arith.constant dense<0.000000e+00> : vector<64x128xf32>
    %66 = tpu.matmul %63, %65, %cst_88 {dimension_numbers = #tpu.dot_dimension_numbers<[1], [0], [0], [1], [0, 0, 1, 1], [], []>} : vector<64x80xf32>, vector<80x128xf32>, vector<64x128xf32> -> vector<64x128xf32>
    %67 = arith.addf %61, %66 : vector<64x128xf32>
    %c2_89 = arith.constant 2 : index
    %c0_90 = arith.constant 0 : index
    %c0_91 = arith.constant 0 : index
    %68 = vector.load %arg15[%c2_89, %c0_90, %c0_91] : memref<10x8x80xf32, #tpu.memory_space<vmem>>, vector<8x8x80xf32>
    %69 = vector.shape_cast %68 : vector<8x8x80xf32> to vector<64x80xf32>
    %c2_92 = arith.constant 2 : index
    %c0_93 = arith.constant 0 : index
    %c0_94 = arith.constant 0 : index
    %70 = vector.load %arg5[%c2_92, %c0_93, %c0_94] : memref<3x80x128xf32, #tpu.memory_space<vmem>>, vector<1x80x128xf32>
    %71 = vector.shape_cast %70 : vector<1x80x128xf32> to vector<80x128xf32>
    %cst_95 = arith.constant dense<0.000000e+00> : vector<64x128xf32>
    %72 = tpu.matmul %69, %71, %cst_95 {dimension_numbers = #tpu.dot_dimension_numbers<[1], [0], [0], [1], [0, 0, 1, 1], [], []>} : vector<64x80xf32>, vector<80x128xf32>, vector<64x128xf32> -> vector<64x128xf32>
    %73 = arith.addf %67, %72 : vector<64x128xf32>
    %c0_96 = arith.constant 0 : index
    %c0_97 = arith.constant 0 : index
    %74 = vector.load %arg6[%c0_96, %c0_97] : memref<1x128xf32, #tpu.memory_space<vmem>>, vector<1x128xf32>
    %75 = vector.broadcast %74 : vector<1x128xf32> to vector<64x128xf32>
    %76 = arith.addf %73, %75 : vector<64x128xf32>
    %cst_98 = arith.constant 0.000000e+00 : f32
    %77 = vector.broadcast %cst_98 : f32 to vector<64x128xf32>
    %78 = arith.maximumf %76, %77 : vector<64x128xf32>
    %79 = vector.shape_cast %78 : vector<64x128xf32> to vector<8x8x128xf32>
    %c0_99 = arith.constant 0 : index
    %c0_100 = arith.constant 0 : index
    %c0_101 = arith.constant 0 : index
    %80 = vector.load %arg16[%c0_99, %c0_100, %c0_101] : memref<8x8x128xf32, #tpu.memory_space<vmem>>, vector<8x8x128xf32>
    tpu.vector_store %arg16[%c0_99, %c0_100, %c0_101], %79 {strides = array<i32>} : memref<8x8x128xf32, #tpu.memory_space<vmem>>, vector<8x8x128xf32>,
    %c0_102 = arith.constant 0 : index
    %c0_103 = arith.constant 0 : index
    %c0_104 = arith.constant 0 : index
    %81 = tpu.strided_load %arg16[%c0_102, %c0_103, %c0_104] {strides = array<i32: 2, 1, 1>} : memref<8x8x128xf32, #tpu.memory_space<vmem>>, vector<4x8x128xf32>
    %c1_105 = arith.constant 1 : index
    %c0_106 = arith.constant 0 : index
    %c0_107 = arith.constant 0 : index
    %82 = tpu.strided_load %arg16[%c1_105, %c0_106, %c0_107] {strides = array<i32: 2, 1, 1>} : memref<8x8x128xf32, #tpu.memory_space<vmem>>, vector<4x8x128xf32>
    %83 = arith.maximumf %81, %82 : vector<4x8x128xf32>
    %84 = vector.shape_cast %83 : vector<4x8x128xf32> to vector<32x128xf32>
    %c0_108 = arith.constant 0 : index
    %c0_109 = arith.constant 0 : index
    %c0_110 = arith.constant 0 : index
    %85 = vector.load %arg7[%c0_108, %c0_109, %c0_110] : memref<2x128x64xf32, #tpu.memory_space<vmem>>, vector<1x128x64xf32>
    %86 = vector.shape_cast %85 : vector<1x128x64xf32> to vector<128x64xf32>
    %cst_111 = arith.constant dense<0.000000e+00> : vector<32x64xf32>
    %87 = tpu.matmul %84, %86, %cst_111 {dimension_numbers = #tpu.dot_dimension_numbers<[1], [0], [0], [1], [0, 0, 1, 1], [], []>} : vector<32x128xf32>, vector<128x64xf32>, vector<32x64xf32> -> vector<32x64xf32>
    %c1_112 = arith.constant 1 : index
    %c0_113 = arith.constant 0 : index
    %c0_114 = arith.constant 0 : index
    %88 = vector.load %arg7[%c1_112, %c0_113, %c0_114] : memref<2x128x64xf32, #tpu.memory_space<vmem>>, vector<1x128x64xf32>
    %89 = vector.shape_cast %88 : vector<1x128x64xf32> to vector<128x64xf32>
    %cst_115 = arith.constant dense<0.000000e+00> : vector<32x64xf32>
    %90 = tpu.matmul %84, %89, %cst_115 {dimension_numbers = #tpu.dot_dimension_numbers<[1], [0], [0], [1], [0, 0, 1, 1], [], []>} : vector<32x128xf32>, vector<128x64xf32>, vector<32x64xf32> -> vector<32x64xf32>
    %91 = arith.maximumf %87, %90 : vector<32x64xf32>
    %92 = vector.shape_cast %91 : vector<32x64xf32> to vector<4x8x64xf32>
    %c0_116 = arith.constant 0 : index
    %c0_117 = arith.constant 0 : index
    %c0_118 = arith.constant 0 : index
    %93 = vector.load %arg11[%c0_116, %c0_117, %c0_118] : memref<4x8x64xf32, #tpu.memory_space<vmem>>, vector<4x8x64xf32>
    tpu.vector_store %arg11[%c0_116, %c0_117, %c0_118], %92 {strides = array<i32>} : memref<4x8x64xf32, #tpu.memory_space<vmem>>, vector<4x8x64xf32>,
    %94 = vector.shape_cast %91 : vector<32x64xf32> to vector<4x8x64xf32>
    %95 = vector.extract_strided_slice %94 {offsets = [0, 0, 0], sizes = [1, 8, 64], strides = [1, 1, 1]} : vector<4x8x64xf32> to vector<1x8x64xf32>
    %96 = vector.shape_cast %95 : vector<1x8x64xf32> to vector<8x64xf32>
    %c0_119 = arith.constant 0 : index
    %c0_120 = arith.constant 0 : index
    %c0_121 = arith.constant 0 : index
    %97 = vector.load %arg8[%c0_119, %c0_120, %c0_121] : memref<4x64x10xf32, #tpu.memory_space<vmem>>, vector<1x64x10xf32>
    %98 = vector.shape_cast %97 : vector<1x64x10xf32> to vector<64x10xf32>
    %cst_122 = arith.constant dense<0.000000e+00> : vector<8x10xf32>
    %99 = tpu.matmul %96, %98, %cst_122 {dimension_numbers = #tpu.dot_dimension_numbers<[1], [0], [0], [1], [0, 0, 1, 1], [], []>} : vector<8x64xf32>, vector<64x10xf32>, vector<8x10xf32> -> vector<8x10xf32>
    %100 = vector.extract_strided_slice %94 {offsets = [1, 0, 0], sizes = [1, 8, 64], strides = [1, 1, 1]} : vector<4x8x64xf32> to vector<1x8x64xf32>
    %101 = vector.shape_cast %100 : vector<1x8x64xf32> to vector<8x64xf32>
    %c1_123 = arith.constant 1 : index
    %c0_124 = arith.constant 0 : index
    %c0_125 = arith.constant 0 : index
    %102 = vector.load %arg8[%c1_123, %c0_124, %c0_125] : memref<4x64x10xf32, #tpu.memory_space<vmem>>, vector<1x64x10xf32>
    %103 = vector.shape_cast %102 : vector<1x64x10xf32> to vector<64x10xf32>
    %cst_126 = arith.constant dense<0.000000e+00> : vector<8x10xf32>
    %104 = tpu.matmul %101, %103, %cst_126 {dimension_numbers = #tpu.dot_dimension_numbers<[1], [0], [0], [1], [0, 0, 1, 1], [], []>} : vector<8x64xf32>, vector<64x10xf32>, vector<8x10xf32> -> vector<8x10xf32>
    %105 = arith.addf %99, %104 : vector<8x10xf32>
    %106 = vector.extract_strided_slice %94 {offsets = [2, 0, 0], sizes = [1, 8, 64], strides = [1, 1, 1]} : vector<4x8x64xf32> to vector<1x8x64xf32>
    %107 = vector.shape_cast %106 : vector<1x8x64xf32> to vector<8x64xf32>
    %c2_127 = arith.constant 2 : index
    %c0_128 = arith.constant 0 : index
    %c0_129 = arith.constant 0 : index
    %108 = vector.load %arg8[%c2_127, %c0_128, %c0_129] : memref<4x64x10xf32, #tpu.memory_space<vmem>>, vector<1x64x10xf32>
    %109 = vector.shape_cast %108 : vector<1x64x10xf32> to vector<64x10xf32>
    %cst_130 = arith.constant dense<0.000000e+00> : vector<8x10xf32>
    %110 = tpu.matmul %107, %109, %cst_130 {dimension_numbers = #tpu.dot_dimension_numbers<[1], [0], [0], [1], [0, 0, 1, 1], [], []>} : vector<8x64xf32>, vector<64x10xf32>, vector<8x10xf32> -> vector<8x10xf32>
    %111 = arith.addf %105, %110 : vector<8x10xf32>
    %112 = vector.extract_strided_slice %94 {offsets = [3, 0, 0], sizes = [1, 8, 64], strides = [1, 1, 1]} : vector<4x8x64xf32> to vector<1x8x64xf32>
    %113 = vector.shape_cast %112 : vector<1x8x64xf32> to vector<8x64xf32>
    %c3 = arith.constant 3 : index
    %c0_131 = arith.constant 0 : index
    %c0_132 = arith.constant 0 : index
    %114 = vector.load %arg8[%c3, %c0_131, %c0_132] : memref<4x64x10xf32, #tpu.memory_space<vmem>>, vector<1x64x10xf32>
    %115 = vector.shape_cast %114 : vector<1x64x10xf32> to vector<64x10xf32>
    %cst_133 = arith.constant dense<0.000000e+00> : vector<8x10xf32>
    %116 = tpu.matmul %113, %115, %cst_133 {dimension_numbers = #tpu.dot_dimension_numbers<[1], [0], [0], [1], [0, 0, 1, 1], [], []>} : vector<8x64xf32>, vector<64x10xf32>, vector<8x10xf32> -> vector<8x10xf32>
    %117 = arith.addf %111, %116 : vector<8x10xf32>
    %c0_134 = arith.constant 0 : index
    %c0_135 = arith.constant 0 : index
    %118 = vector.load %arg9[%c0_134, %c0_135] : memref<1x10xf32, #tpu.memory_space<vmem>>, vector<1x10xf32>
    %119 = vector.broadcast %118 : vector<1x10xf32> to vector<8x10xf32>
    %120 = arith.addf %117, %119 : vector<8x10xf32>
    %c0_136 = arith.constant 0 : index
    %c0_137 = arith.constant 0 : index
    %121 = vector.load %arg12[%c0_136, %c0_137] : memref<8x10xf32, #tpu.memory_space<vmem>>, vector<8x10xf32>
    tpu.vector_store %arg12[%c0_136, %c0_137], %120 {strides = array<i32>} : memref<8x10xf32, #tpu.memory_space<vmem>>, vector<8x10xf32>,
    return
  }
  func.func @transform_0(%arg0: i32) -> (i32, i32, i32) {
    %c0_i32 = arith.constant 0 : i32
    %c0_i32_0 = arith.constant 0 : i32
    %c0_i32_1 = arith.constant 0 : i32
    return %c0_i32, %arg0, %c0_i32_0 : i32, i32, i32
  }
  func.func @transform_1(%arg0: i32) -> (i32, i32, i32) {
    %c0_i32 = arith.constant 0 : i32
    %c0_i32_0 = arith.constant 0 : i32
    %c0_i32_1 = arith.constant 0 : i32
    %c0_i32_2 = arith.constant 0 : i32
    return %c0_i32, %c0_i32_0, %c0_i32_1 : i32, i32, i32
  }
  func.func @transform_2(%arg0: i32) -> (i32, i32) {
    %c0_i32 = arith.constant 0 : i32
    %c0_i32_0 = arith.constant 0 : i32
    %c0_i32_1 = arith.constant 0 : i32
    return %c0_i32, %c0_i32_0 : i32, i32
  }
  func.func @transform_3(%arg0: i32) -> (i32, i32, i32) {
    %c0_i32 = arith.constant 0 : i32
    %c0_i32_0 = arith.constant 0 : i32
    %c0_i32_1 = arith.constant 0 : i32
    %c0_i32_2 = arith.constant 0 : i32
    return %c0_i32, %c0_i32_0, %c0_i32_1 : i32, i32, i32
  }
  func.func @transform_4(%arg0: i32) -> (i32, i32, i32) {
    %c0_i32 = arith.constant 0 : i32
    %c0_i32_0 = arith.constant 0 : i32
    %c0_i32_1 = arith.constant 0 : i32
    %c0_i32_2 = arith.constant 0 : i32
    return %c0_i32, %c0_i32_0, %c0_i32_1 : i32, i32, i32
  }
  func.func @transform_5(%arg0: i32) -> (i32, i32) {
    %c0_i32 = arith.constant 0 : i32
    %c0_i32_0 = arith.constant 0 : i32
    %c0_i32_1 = arith.constant 0 : i32
    return %c0_i32, %c0_i32_0 : i32, i32
  }
  func.func @transform_6(%arg0: i32) -> (i32, i32, i32) {
    %c0_i32 = arith.constant 0 : i32
    %c0_i32_0 = arith.constant 0 : i32
    %c0_i32_1 = arith.constant 0 : i32
    %c0_i32_2 = arith.constant 0 : i32
    return %c0_i32, %c0_i32_0, %c0_i32_1 : i32, i32, i32
  }
  func.func @transform_7(%arg0: i32) -> (i32, i32, i32) {
    %c0_i32 = arith.constant 0 : i32
    %c0_i32_0 = arith.constant 0 : i32
    %c0_i32_1 = arith.constant 0 : i32
    %c0_i32_2 = arith.constant 0 : i32
    return %c0_i32, %c0_i32_0, %c0_i32_1 : i32, i32, i32
  }
  func.func @transform_8(%arg0: i32) -> (i32, i32) {
    %c0_i32 = arith.constant 0 : i32
    %c0_i32_0 = arith.constant 0 : i32
    %c0_i32_1 = arith.constant 0 : i32
    return %c0_i32, %c0_i32_0 : i32, i32
  }
  func.func @transform_9(%arg0: i32) -> (i32, i32, i32) {
    %c0_i32 = arith.constant 0 : i32
    %c0_i32_0 = arith.constant 0 : i32
    %c0_i32_1 = arith.constant 0 : i32
    return %c0_i32, %arg0, %c0_i32_0 : i32, i32, i32
  }
  func.func @transform_10(%arg0: i32) -> (i32, i32, i32) {
    %c0_i32 = arith.constant 0 : i32
    %c0_i32_0 = arith.constant 0 : i32
    %c0_i32_1 = arith.constant 0 : i32
    return %c0_i32, %arg0, %c0_i32_0 : i32, i32, i32
  }
  func.func @transform_11(%arg0: i32) -> (i32, i32) {
    %c0_i32 = arith.constant 0 : i32
    %c0_i32_0 = arith.constant 0 : i32
    return %arg0, %c0_i32 : i32, i32
  }
}

</mosaic_0001>

<bundles_post_ra>
// kernel: teacher_forward.1
= control target key start
LH: loop header
LB: loop body
LE: loop exit
PB: predicated region body
PF: predicated region fallthrough
CT: control target
= control target key end

     0   :  { %vm39_vm0 = vcmask 31744   ;;  %vm58_vm1 = vcmask 589344   ;;  %v3539_v2 = vmov 0.0   ;;  %vm35_vm2 = vcmask 588800   ;;  %s3540_s21 = smov 4   ;;  %s4528_s0 = inlined_call_operand.vmem [shape: f32[16,8,64], index: 0, kind: input, shape index: {}]   ;;  %s4529_s1 = inlined_call_operand.vmem [shape: f32[3,72,128], index: 1, kind: input, shape index: {}]   ;;  %s4530_s3 = inlined_call_operand.vmem [shape: f32[2,128,64], index: 3, kind: input, shape index: {}]   ;;  %s4531_s2 = inlined_call_operand.vmem [shape: f32[1,128], index: 2, kind: input, shape index: {}]   ;;  %s4532_s4 = inlined_call_operand.vmem [shape: f32[3,80,128], index: 4, kind: input, shape index: {}]   ;;  %s4533_s9 = inlined_call_operand.vmem [shape: f32[8,8,64], index: 9, kind: output, shape index: {0}]   ;;  %s4534_s6 = inlined_call_operand.vmem [shape: f32[2,128,64], index: 6, kind: input, shape index: {}]   ;;  %s4535_s5 = inlined_call_operand.vmem [shape: f32[1,128], index: 5, kind: input, shape index: {}]   ;;  %s4536_s7 = inlined_call_operand.vmem [shape: f32[4,64,10], index: 7, kind: input, shape index: {}]   ;;  %s4537_s10 = inlined_call_operand.vmem [shape: f32[4,8,64], index: 10, kind: output, shape index: {1}]   ;;  %s4538_s8 = inlined_call_operand.vmem [shape: f32[1,10], index: 8, kind: input, shape index: {}]   ;;  %s4539_s11 = inlined_call_operand.vmem [shape: f32[8,10], index: 11, kind: output, shape index: {2}]  }
   0x1   :  { %v77_v0 = vld [vmem:[%s4528_s0] sm:$0xff]  ;;  %v79_v1 = vld [vmem:[%s4528_s0 + $0x10] sm:$0xff]  ;;  %41 = vst.msk [vmem:[#allocation2 + $0x8] sm:$0xff] %vm39_vm0, %v3539_v2  ;;  %42 = vst.msk [vmem:[#allocation2 + $0x10] sm:$0xff] %vm39_vm0, %v3539_v2  ;;  %vm158_vm3 = vcmask 556064   ;;  %vm1192_vm4 = vcmask 64512  }
   0x2   :  { %43 = vst.msk [vmem:[#allocation2 + $0x18] sm:$0xff] %vm39_vm0, %v3539_v2  ;;  %44 = vst.msk [vmem:[#allocation2 + $0x20] sm:$0xff] %vm39_vm0, %v3539_v2  ;;  %109 = vrot.lane.b32.xlu0 %v77_v0, %s3540_s21  ;;  %113 = vrot.lane.b32.xlu1 %v79_v1, %s3540_s21  ;;  %v78_v3 = vld [vmem:[%s4528_s0 + $0x8] sm:$0xff]  ;;  %v80_v4 = vld [vmem:[%s4528_s0 + $0x18] sm:$0xff]  ;;  %vm1203_vm5 = vcmask 654912   ;;  %vm1188_vm6 = vcmask 654336  }
   0x3   :  { %45 = vst.msk [vmem:[#allocation2 + $0x28] sm:$0xff] %vm39_vm0, %v3539_v2  ;;  %46 = vst.msk [vmem:[#allocation2 + $0x30] sm:$0xff] %vm39_vm0, %v3539_v2  ;;  %v81_v5 = vld [vmem:[%s4528_s0 + $0x20] sm:$0xff]  ;;  %v82_v6 = vld [vmem:[%s4528_s0 + $0x28] sm:$0xff]  ;;  %vm1179_vm7 = vcmask 523264   ;;  %vm1247_vm8 = vcmask 588864  }
   0x4   :  { %47 = vst.msk [vmem:[#allocation2 + $0x38] sm:$0xff] %vm39_vm0, %v3539_v2  ;;  %48 = vst.msk [vmem:[#allocation2 + $0x40] sm:$0xff] %vm39_vm0, %v3539_v2  ;;  %v2314_v7 = vld [vmem:[%s4529_s1 + $0x48] sm:$0xff]  ;;  %v2315_v8 = vld [vmem:[%s4529_s1 + $0x50] sm:$0xff]  ;;  %vm3543_vm9 = vmmov 0   ;;  %vm2300_vm10 = vcmask 80896  }
   0x5   :  { %49 = vst.msk [vmem:[#allocation2 + $0x48] sm:$0xff] %vm39_vm0, %v3539_v2  ;;  %50 = vst.msk [vmem:[#allocation2 + $0x50] sm:$0xff] %vm39_vm0, %v3539_v2  ;;  %v2316_v9 = vld [vmem:[%s4529_s1 + $0x58] sm:$0xff]  ;;  %v3202_v10 = vpack.c.bf16 %v2315_v8, %v2314_v7  ;;  %v2317_v11 = vld [vmem:[%s4529_s1 + $0x60] sm:$0xff] }
   0x6   :  { %51 = vst.msk [vmem:[#allocation2 + $0x58] sm:$0xff] %vm39_vm0, %v3539_v2  ;;  %52 = vst.msk [vmem:[#allocation2 + $0x60] sm:$0xff] %vm39_vm0, %v3539_v2  ;;  %111 = vrot.lane.b32.xlu0 %v78_v3, %s3540_s21  ;;  %115 = vrot.lane.b32.xlu1 %v80_v4, %s3540_s21  ;;  %v3206_v12 = vpack.c.bf16 %v2317_v11, %v2316_v9  ;;  %v2318_v13 = vld [vmem:[%s4529_s1 + $0x68] sm:$0xff]  ;;  %v2319_v14 = vld [vmem:[%s4529_s1 + $0x70] sm:$0xff] }
   0x7   :  { %53 = vst.msk [vmem:[#allocation2 + $0x68] sm:$0xff] %vm39_vm0, %v3539_v2  ;;  %54 = vst.msk [vmem:[#allocation2 + $0x70] sm:$0xff] %vm39_vm0, %v3539_v2  ;;  %v83_v15 = vld [vmem:[%s4528_s0 + $0x30] sm:$0xff]  ;;  %v84_v16 = vld [vmem:[%s4528_s0 + $0x38] sm:$0xff]  ;;  %3203 = vmatprep.subr.bf16.mxu0 %v3202_v10  ;;  %v3210_v17 = vpack.c.bf16 %v2319_v14, %v2318_v13 }
   0x8   :  { %55 = vst.msk [vmem:[#allocation2 + $0x78] sm:$0xff] %vm39_vm0, %v3539_v2  ;;  %56 = vst.msk [vmem:[#allocation2 + $0x80] sm:$0xff] %vm39_vm0, %v3539_v2  ;;  %3205 = vmatpush3.bf16.msra.mxu0 %v3202_v10  ;;  %v2320_v18 = vld [vmem:[%s4529_s1 + $0x78] sm:$0xff]  ;;  %v2321_v19 = vld [vmem:[%s4529_s1 + $0x80] sm:$0xff] }
   0x9   :  { %60 = vst.msk [vmem:[#allocation2 + $0x8] sm:$0xff] %vm58_vm1, %v3539_v2  ;;  %61 = vst.msk [vmem:[#allocation2 + $0x10] sm:$0xff] %vm58_vm1, %v3539_v2  ;;  %3207 = vmatprep.subr.bf16.mxu0 %v3206_v12  ;;  %v85_v20 = vld [vmem:[%s4528_s0 + $0x40] sm:$0xff]  ;;  %v86_v21 = vld [vmem:[%s4528_s0 + $0x48] sm:$0xff]  ;;  %v3214_v22 = vpack.c.bf16 %v2321_v19, %v2320_v18 }
   0xa   :  { %62 = vst.msk [vmem:[#allocation2 + $0x18] sm:$0xff] %vm58_vm1, %v3539_v2  ;;  %63 = vst.msk [vmem:[#allocation2 + $0x20] sm:$0xff] %vm58_vm1, %v3539_v2  ;;  %117 = vrot.lane.b32.xlu0 %v81_v5, %s3540_s21  ;;  %119 = vrot.lane.b32.xlu1 %v82_v6, %s3540_s21  ;;  %v87_v23 = vld [vmem:[%s4528_s0 + $0x50] sm:$0xff]  ;;  %v88_v24 = vld [vmem:[%s4528_s0 + $0x58] sm:$0xff] }
   0xb   :  { %64 = vst.msk [vmem:[#allocation2 + $0x28] sm:$0xff] %vm58_vm1, %v3539_v2  ;;  %65 = vst.msk [vmem:[#allocation2 + $0x30] sm:$0xff] %vm58_vm1, %v3539_v2  ;;  %v2322_v25 = vld [vmem:[%s4529_s1 + $0x88] sm:$0xff]  ;;  %v191_v26 = vld [vmem:[%s4529_s1] sm:$0xff] }
   0xc   :  { %66 = vst.msk [vmem:[#allocation2 + $0x38] sm:$0xff] %vm58_vm1, %v3539_v2  ;;  %67 = vst.msk [vmem:[#allocation2 + $0x40] sm:$0xff] %vm58_vm1, %v3539_v2  ;;  %3209 = vmatpush3.bf16.msra.mxu0 %v3206_v12  ;;  %v192_v27 = vld [vmem:[%s4529_s1 + $0x8] sm:$0xff]  ;;  %v89_v28 = vld [vmem:[%s4528_s0 + $0x60] sm:$0xff] }
   0xd   :  { %68 = vst.msk [vmem:[#allocation2 + $0x48] sm:$0xff] %vm58_vm1, %v3539_v2  ;;  %69 = vst.msk [vmem:[#allocation2 + $0x50] sm:$0xff] %vm58_vm1, %v3539_v2  ;;  %3211 = vmatprep.subr.bf16.mxu0 %v3210_v17  ;;  %v90_v29 = vld [vmem:[%s4528_s0 + $0x68] sm:$0xff]  ;;  %v3767_v30 = vpack.c.bf16 %v192_v27, %v191_v26  ;;  %v91_v31 = vld [vmem:[%s4528_s0 + $0x70] sm:$0xff] }
   0xe   :  { %70 = vst.msk [vmem:[#allocation2 + $0x58] sm:$0xff] %vm58_vm1, %v3539_v2  ;;  %71 = vst.msk [vmem:[#allocation2 + $0x60] sm:$0xff] %vm58_vm1, %v3539_v2  ;;  %121 = vrot.lane.b32.xlu0 %v83_v15, %s3540_s21  ;;  %123 = vrot.lane.b32.xlu1 %v84_v16, %s3540_s21  ;;  %v92_v32 = vld [vmem:[%s4528_s0 + $0x78] sm:$0xff]  ;;  %v928_v33 = vld [vmem:[%s4530_s3] sm:$0xff] }
   0xf   :  { %72 = vst.msk [vmem:[#allocation2 + $0x68] sm:$0xff] %vm58_vm1, %v3539_v2  ;;  %73 = vst.msk [vmem:[#allocation2 + $0x70] sm:$0xff] %vm58_vm1, %v3539_v2  ;;  %v929_v34 = vld [vmem:[%s4530_s3 + $0x8] sm:$0xff]  ;;  %v930_v35 = vld [vmem:[%s4530_s3 + $0x10] sm:$0xff] }
  0x10   :  { %74 = vst.msk [vmem:[#allocation2 + $0x78] sm:$0xff] %vm58_vm1, %v3539_v2  ;;  %75 = vst.msk [vmem:[#allocation2 + $0x80] sm:$0xff] %vm58_vm1, %v3539_v2  ;;  %3213 = vmatpush3.bf16.msra.mxu0 %v3210_v17  ;;  %v3250_v36 = vpack.c.bf16 %v929_v34, %v928_v33  ;;  %v931_v37 = vld [vmem:[%s4530_s3 + $0x18] sm:$0xff]  ;;  %v932_v39 = vld [vmem:[%s4530_s3 + $0x20] sm:$0xff] }
  0x11   :  { %36 = vst.msk [vmem:[#allocation2] sm:$0xff] %vm35_vm2, %v3539_v2  ;;  %38 = vst.msk [vmem:[#allocation2 + $0x88] sm:$0xff] %vm35_vm2, %v3539_v2  ;;  %3215 = vmatprep.subr.bf16.mxu0 %v3214_v22  ;;  %v3254_v38 = vpack.c.bf16 %v931_v37, %v930_v35  ;;  %v933_v40 = vld [vmem:[%s4530_s3 + $0x28] sm:$0xff]  ;;  %v934_v42 = vld [vmem:[%s4530_s3 + $0x30] sm:$0xff] }
  0x12   :  { %40 = vst.msk [vmem:[#allocation2] sm:$0xff] %vm39_vm0, %v3539_v2  ;;  %57 = vst.msk [vmem:[#allocation2 + $0x88] sm:$0xff] %vm39_vm0, %v3539_v2  ;;  %125 = vrot.lane.b32.xlu0 %v85_v20, %s3540_s21  ;;  %127 = vrot.lane.b32.xlu1 %v86_v21, %s3540_s21  ;;  %v3258_v41 = vpack.c.bf16 %v933_v40, %v932_v39  ;;  %v935_v43 = vld [vmem:[%s4530_s3 + $0x38] sm:$0xff]  ;;  %v936_v45 = vld [vmem:[%s4530_s3 + $0x40] sm:$0xff] }
  0x13   :  { %59 = vst.msk [vmem:[#allocation2] sm:$0xff] %vm58_vm1, %v3539_v2  ;;  %76 = vst.msk [vmem:[#allocation2 + $0x88] sm:$0xff] %vm58_vm1, %v3539_v2  ;;  %3251 = vmatprep.subr.bf16.mxu1 %v3250_v36  ;;  %v3262_v44 = vpack.c.bf16 %v935_v43, %v934_v42  ;;  %v937_v46 = vld [vmem:[%s4530_s3 + $0x48] sm:$0xff]  ;;  %v938_v48 = vld [vmem:[%s4530_s3 + $0x50] sm:$0xff] }
  0x14   :  { %3217 = vmatpush3.bf16.msra.mxu0 %v3214_v22  ;;  %3253 = vmatpush3.bf16.msra.mxu1 %v3250_v36  ;;  %v3266_v47 = vpack.c.bf16 %v937_v46, %v936_v45  ;;  %v939_v49 = vld [vmem:[%s4530_s3 + $0x58] sm:$0xff]  ;;  %v193_v58 = vld [vmem:[%s4529_s1 + $0x10] sm:$0xff]  ;;  %v195_v1 = vld [vmem:[%s4529_s1 + $0x20] sm:$0xff]  ;;  %1195 = vst.msk [vmem:[#allocation4 + $0x10] sm:$0xff] %vm1192_vm4, %v3539_v2 }
  0x15   :  { %2756 = vmatprep.subr.mxu0 %v2322_v25  ;;  %3255 = vmatprep.subr.bf16.mxu1 %v3254_v38  ;;  %v3270_v50 = vpack.c.bf16 %v939_v49, %v938_v48  ;;  %v194_v59 = vld [vmem:[%s4529_s1 + $0x18] sm:$0xff]  ;;  %v196_v3 = vld [vmem:[%s4529_s1 + $0x28] sm:$0xff]  ;;  %v197_v9 = vld [vmem:[%s4529_s1 + $0x30] sm:$0xff]  ;;  %1194 = vst.msk [vmem:[#allocation4 + $0x8] sm:$0xff] %vm1192_vm4, %v3539_v2 }
  0x16   :  { %129 = vrot.lane.b32.xlu0 %v87_v23, %s3540_s21  ;;  %131 = vrot.lane.b32.xlu1 %v88_v24, %s3540_s21  ;;  %v3222_v61 = vpack.c.bf16 %v194_v59, %v193_v58  ;;  %v3226_v5 = vpack.c.bf16 %v196_v3, %v195_v1  ;;  %v198_v10 = vld [vmem:[%s4529_s1 + $0x38] sm:$0xff]  ;;  %v199_v17 = vld [vmem:[%s4529_s1 + $0x40] sm:$0xff]  ;;  %1196 = vst.msk [vmem:[#allocation4 + $0x18] sm:$0xff] %vm1192_vm4, %v3539_v2  ;;  %1197 = vst.msk [vmem:[#allocation4 + $0x20] sm:$0xff] %vm1192_vm4, %v3539_v2 }
  0x17   :  { %v3230_v12 = vpack.c.bf16 %v198_v10, %v197_v9  ;;  %v2355_v21 = vld [vmem:[%s4529_s1 + $0x90] sm:$0xff]  ;;  %v2356_v22 = vld [vmem:[%s4529_s1 + $0x98] sm:$0xff]  ;;  %v2357_v34 = vld [vmem:[%s4529_s1 + $0xa0] sm:$0xff]  ;;  %1198 = vst.msk [vmem:[#allocation4 + $0x28] sm:$0xff] %vm1192_vm4, %v3539_v2 }
  0x18   :  { %2757 = vmatpush3.msra.mxu0 %v2322_v25  ;;  %3257 = vmatpush3.bf16.msra.mxu1 %v3254_v38  ;;  %v3234_v24 = vpack.c.bf16 %v2356_v22, %v2355_v21  ;;  %v2358_v35 = vld [vmem:[%s4529_s1 + $0xa8] sm:$0xff]  ;;  %v2359_v37 = vld [vmem:[%s4529_s1 + $0xb0] sm:$0xff]  ;;  %v2360_v38 = vld [vmem:[%s4529_s1 + $0xb8] sm:$0xff]  ;;  %1199 = vst.msk [vmem:[#allocation4 + $0x30] sm:$0xff] %vm1192_vm4, %v3539_v2 }
  0x19   :  { %3219 = vmatprep.subr.bf16.mxu0 %v3767_v30  ;;  %3259 = vmatprep.subr.bf16.mxu1 %v3258_v41  ;;  %v3238_v36 = vpack.c.bf16 %v2358_v35, %v2357_v34  ;;  %v3242_v39 = vpack.c.bf16 %v2360_v38, %v2359_v37  ;;  %v2361_v40 = vld [vmem:[%s4529_s1 + $0xc0] sm:$0xff]  ;;  %v2363_v43 = vld [vmem:[%s4529_s1 + $0xd0] sm:$0xff]  ;;  %v941_v46 = vld [vmem:[%s4530_s3 + $0x68] sm:$0xff]  ;;  %1200 = vst.msk [vmem:[#allocation4 + $0x38] sm:$0xff] %vm1192_vm4, %v3539_v2 }
  0x1a   :  { %133 = vrot.lane.b32.xlu0 %v89_v28, %s3540_s21  ;;  %135 = vrot.lane.b32.xlu1 %v90_v29, %s3540_s21  ;;  %v175_v33 = vld [vmem:[#allocation2] sm:$0xff]  ;;  %v942_v48 = vld [vmem:[%s4530_s3 + $0x70] sm:$0xff]  ;;  %v943_v49 = vld [vmem:[%s4530_s3 + $0x78] sm:$0xff]  ;;  %1201 = vst.msk [vmem:[#allocation4 + $0x40] sm:$0xff] %vm1192_vm4, %v3539_v2 }
  0x1b   :  { %v940_v45 = vld [vmem:[%s4530_s3 + $0x60] sm:$0xff]  ;;  %v2390_v35 = vld [vmem:[%s4530_s3 + $0xc8] sm:$0xff]  ;;  %1206 = vst.msk [vmem:[#allocation4 + $0x10] sm:$0xff] %vm1203_vm5, %v3539_v2  ;;  %1205 = vst.msk [vmem:[#allocation4 + $0x8] sm:$0xff] %vm1203_vm5, %v3539_v2 }
  0x1c   :  { %3261 = vmatpush3.bf16.msra.mxu1 %v3258_v41  ;;  %v2362_v41 = vld [vmem:[%s4529_s1 + $0xc8] sm:$0xff]  ;;  %v2389_v34 = vld [vmem:[%s4530_s3 + $0xc0] sm:$0xff]  ;;  %1207 = vst.msk [vmem:[#allocation4 + $0x18] sm:$0xff] %vm1203_vm5, %v3539_v2  ;;  %1208 = vst.msk [vmem:[#allocation4 + $0x20] sm:$0xff] %vm1203_vm5, %v3539_v2  ;;  %s3541_s1 = smov 8  }
  0x1d   :  { %3263 = vmatprep.subr.bf16.mxu1 %v3262_v44  ;;  %v3246_v42 = vpack.c.bf16 %v2362_v41, %v2361_v40  ;;  %1209 = vst.msk [vmem:[#allocation4 + $0x28] sm:$0xff] %vm1203_vm5, %v3539_v2  ;;  %1210 = vst.msk [vmem:[#allocation4 + $0x30] sm:$0xff] %vm1203_vm5, %v3539_v2 }
  0x1e   :  { %137 = vrot.lane.b32.xlu0 %v91_v31, %s3540_s21  ;;  %139 = vrot.lane.b32.xlu1 %v92_v32, %s3540_s21  ;;  %1211 = vst.msk [vmem:[#allocation4 + $0x38] sm:$0xff] %vm1203_vm5, %v3539_v2  ;;  %1212 = vst.msk [vmem:[#allocation4 + $0x40] sm:$0xff] %vm1203_vm5, %v3539_v2 }
  0x1f   :  { %1189 = vst.msk [vmem:[#allocation4] sm:$0xff] %vm1188_vm6, %v3539_v2  ;;  %1191 = vst.msk [vmem:[#allocation4 + $0x48] sm:$0xff] %vm1188_vm6, %v3539_v2 }
  0x20   :  { %3265 = vmatpush3.bf16.msra.mxu1 %v3262_v44  ;;  %v628_v44 = vld [vmem:[#allocation2 + $0x88] sm:$0xff]  ;;  %1193 = vst.msk [vmem:[#allocation4] sm:$0xff] %vm1192_vm4, %v3539_v2  ;;  %1202 = vst.msk [vmem:[#allocation4 + $0x48] sm:$0xff] %vm1192_vm4, %v3539_v2 }
  0x21   :  { %3267 = vmatprep.subr.bf16.mxu1 %v3266_v47  ;;  %1204 = vst.msk [vmem:[#allocation4] sm:$0xff] %vm1203_vm5, %v3539_v2  ;;  %1213 = vst.msk [vmem:[#allocation4 + $0x48] sm:$0xff] %vm1203_vm5, %v3539_v2 }
  0x24   :  { %3269 = vmatpush3.bf16.msra.mxu1 %v3266_v47  ;;  %v3274_v47 = vpack.c.bf16 %v941_v46, %v940_v45  ;;  %v2392_v45 = vld [vmem:[%s4530_s3 + $0xd8] sm:$0xff] }
  0x25   :  { %3271 = vmatprep.subr.bf16.mxu1 %v3270_v50 }
  0x28   :  { %3273 = vmatpush3.bf16.msra.mxu1 %v3270_v50  ;;  %v3278_v50 = vpack.c.bf16 %v943_v49, %v942_v48 }
  0x29   :  { %3275 = vmatprep.subr.bf16.mxu1 %v3274_v47 }
  0x2c   :  { %3277 = vmatpush3.bf16.msra.mxu1 %v3274_v47 }
  0x2d   :  { %3279 = vmatprep.subr.bf16.mxu1 %v3278_v50 }
  0x30   :  { %3281 = vmatpush3.bf16.msra.mxu1 %v3278_v50 }
  0x74   :  { %v110_v51 = vpop.permute.xlu0 %109  ;;  %v114_v52 = vpop.permute.xlu1 %113 }
  0x75   :  { %159 = vst.msk [vmem:[#allocation2 + $0x8] sm:$0xff] %vm158_vm3, %v110_v51  ;;  %161 = vst.msk [vmem:[#allocation2 + $0x18] sm:$0xff] %vm158_vm3, %v114_v52  ;;  %v2381_v51 = vld [vmem:[%s4530_s3 + $0x80] sm:$0xff]  ;;  %v2382_v52 = vld [vmem:[%s4530_s3 + $0x88] sm:$0xff] }
  0x78   :  { %v112_v53 = vpop.permute.xlu0 %111  ;;  %v116_v54 = vpop.permute.xlu1 %115 }
  0x79   :  { %160 = vst.msk [vmem:[#allocation2 + $0x10] sm:$0xff] %vm158_vm3, %v112_v53  ;;  %162 = vst.msk [vmem:[#allocation2 + $0x20] sm:$0xff] %vm158_vm3, %v116_v54  ;;  %v3282_v53 = vpack.c.bf16 %v2382_v52, %v2381_v51  ;;  %v3999_v54 = vld [vmem:[%s4531_s2] ss:$0 sm:$0xff] }
  0x7b   :  { %3283 = vmatprep.subr.bf16.mxu1 %v3282_v53 }
  0x7c   :  { %v3820_v55 = vld [vmem:[#allocation2 + $0x8] sm:$0xff]  ;;  %v118_v56 = vpop.permute.xlu0 %117  ;;  %v120_v57 = vpop.permute.xlu1 %119  ;;  %v3832_v60 = vld [vmem:[#allocation2 + $0x18] sm:$0xff] }
  0x7d   :  { %2758 = vmatprep.mubr.msk.f32.mxu0 %vm35_vm2, %v3820_v55  ;;  %163 = vst.msk [vmem:[#allocation2 + $0x28] sm:$0xff] %vm158_vm3, %v118_v56  ;;  %164 = vst.msk [vmem:[#allocation2 + $0x30] sm:$0xff] %vm158_vm3, %v120_v57 }
  0x80   :  { %v3834_v62 = vld [vmem:[#allocation2 + $0x10] sm:$0xff]  ;;  %v122_v63 = vpop.permute.xlu0 %121  ;;  %v124_v0 = vpop.permute.xlu1 %123  ;;  %v3849_v4 = vld [vmem:[#allocation2 + $0x20] sm:$0xff] }
  0x81   :  { %2759 = vmatmul.mubr.msk.f32.vlgmr.msra.gmra.mrb[0].mxu0 %vm35_vm2, %v3834_v62  ;;  %165 = vst.msk [vmem:[#allocation2 + $0x38] sm:$0xff] %vm158_vm3, %v122_v63  ;;  %166 = vst.msk [vmem:[#allocation2 + $0x40] sm:$0xff] %vm158_vm3, %v124_v0 }
  0x82   :  { %3221 = vmatpush3.bf16.msra.mxu0 %v3767_v30  ;;  %2761 = vmatprep.mubr.msk.f32.mxu0 %vm35_vm2, %v3832_v60 }
  0x83   :  { %3223 = vmatprep.subr.bf16.mxu0 %v3222_v61 }
  0x84   :  { %v126_v6 = vpop.permute.xlu0 %125  ;;  %v128_v7 = vpop.permute.xlu1 %127  ;;  %v3851_v8 = vld [vmem:[#allocation2 + $0x28] sm:$0xff]  ;;  %v3865_v11 = vld [vmem:[#allocation2 + $0x30] sm:$0xff] }
  0x85   :  { %2762 = vmatmul.mubr.msk.f32.gmra.mrb[2].mxu0 %vm35_vm2, %v3849_v4  ;;  %167 = vst.msk [vmem:[#allocation2 + $0x48] sm:$0xff] %vm158_vm3, %v126_v6  ;;  %168 = vst.msk [vmem:[#allocation2 + $0x50] sm:$0xff] %vm158_vm3, %v128_v7 }
  0x86   :  { %2764 = vmatprep.mubr.msk.f32.mxu0 %vm35_vm2, %v3851_v8  ;;  %3225 = vmatpush3.bf16.msra.mxu0 %v3222_v61 }
  0x87   :  { %3227 = vmatprep.subr.bf16.mxu0 %v3226_v5 }
  0x88   :  { %v130_v13 = vpop.permute.xlu0 %129  ;;  %v132_v14 = vpop.permute.xlu1 %131  ;;  %v3867_v15 = vld [vmem:[#allocation2 + $0x38] sm:$0xff]  ;;  %v3875_v16 = vld [vmem:[#allocation2 + $0x40] sm:$0xff] }
  0x89   :  { %2765 = vmatmul.mubr.msk.f32.gmra.mrb[4].mxu0 %vm35_vm2, %v3865_v11  ;;  %169 = vst.msk [vmem:[#allocation2 + $0x58] sm:$0xff] %vm158_vm3, %v130_v13  ;;  %170 = vst.msk [vmem:[#allocation2 + $0x60] sm:$0xff] %vm158_vm3, %v132_v14  ;;  %v2385_v14 = vld [vmem:[%s4530_s3 + $0xa0] sm:$0xff] }
  0x8a   :  { %2767 = vmatprep.mubr.msk.f32.mxu0 %vm35_vm2, %v3867_v15  ;;  %3229 = vmatpush3.bf16.msra.mxu0 %v3226_v5  ;;  %v2384_v5 = vld [vmem:[%s4530_s3 + $0x98] sm:$0xff] }
  0x8b   :  { %3231 = vmatprep.subr.bf16.mxu0 %v3230_v12 }
  0x8c   :  { %v134_v18 = vpop.permute.xlu0 %133  ;;  %v136_v19 = vpop.permute.xlu1 %135  ;;  %v3880_v20 = vld [vmem:[#allocation2 + $0x48] sm:$0xff]  ;;  %v3894_v23 = vld [vmem:[#allocation2 + $0x50] sm:$0xff] }
  0x8d   :  { %2768 = vmatmul.mubr.msk.f32.gmra.mrb[6].mxu0 %vm35_vm2, %v3875_v16  ;;  %171 = vst.msk [vmem:[#allocation2 + $0x68] sm:$0xff] %vm158_vm3, %v134_v18  ;;  %172 = vst.msk [vmem:[#allocation2 + $0x70] sm:$0xff] %vm158_vm3, %v136_v19 }
  0x8e   :  { %2770 = vmatprep.mubr.msk.f32.mxu0 %vm35_vm2, %v3880_v20  ;;  %3233 = vmatpush3.bf16.msra.mxu0 %v3230_v12 }
  0x8f   :  { %2798 = vmatprep.subr.mxu0 %v199_v17 }
  0x90   :  { %v138_v25 = vpop.permute.xlu0 %137  ;;  %v140_v26 = vpop.permute.xlu1 %139  ;;  %v210_v27 = vld [vmem:[#allocation2 + $0x58] sm:$0xff]  ;;  %v211_v28 = vld [vmem:[#allocation2 + $0x60] sm:$0xff] }
  0x91   :  { %2771 = vmatmul.mubr.msk.f32.gmra.mrb[8].mxu0 %vm35_vm2, %v3894_v23  ;;  %173 = vst.msk [vmem:[#allocation2 + $0x78] sm:$0xff] %vm158_vm3, %v138_v25  ;;  %174 = vst.msk [vmem:[#allocation2 + $0x80] sm:$0xff] %vm158_vm3, %v140_v26  ;;  %v2388_v25 = vld [vmem:[%s4530_s3 + $0xb8] sm:$0xff] }
  0x92   :  { %2773 = vmatprep.mubr.msk.f32.mxu0 %vm35_vm2, %v210_v27  ;;  %2799 = vmatpush3.msra.mxu0 %v199_v17 }
  0x93   :  { %3235 = vmatprep.subr.bf16.mxu0 %v3234_v24 }
  0x94   :  { %v212_v29 = vld [vmem:[#allocation2 + $0x68] sm:$0xff]  ;;  %v213_v30 = vld [vmem:[#allocation2 + $0x70] sm:$0xff] }
  0x95   :  { %2774 = vmatmul.mubr.msk.f32.gmra.mrb[10].mxu0 %vm35_vm2, %v211_v28 }
  0x96   :  { %2776 = vmatprep.mubr.msk.f32.mxu0 %vm35_vm2, %v212_v29 }
  0x98   :  { %v214_v31 = vld [vmem:[#allocation2 + $0x78] sm:$0xff]  ;;  %v215_v32 = vld [vmem:[#allocation2 + $0x80] sm:$0xff] }
  0x99   :  { %2777 = vmatmul.mubr.msk.f32.gmra.mrb[12].mxu0 %vm35_vm2, %v213_v30 }
  0x9a   :  { %2779 = vmatprep.mubr.msk.f32.mxu0 %vm35_vm2, %v214_v31 }
  0x9d   :  { %2780 = vmatmul.mubr.msk.f32.gmra.mrb[14].mxu0 %vm35_vm2, %v215_v32 }
  0x9e   :  { %2800 = vmatprep.mubr.msk.f32.mxu0 %vm35_vm2, %v175_v33 }
  0xa1   :  { %2801 = vmatmul.mubr.msk.f32.vlgmr.msra.gmra.mrb[0].mxu0 %vm35_vm2, %v3820_v55 }
  0xa2   :  { %3237 = vmatpush3.bf16.msra.mxu0 %v3234_v24  ;;  %2803 = vmatprep.mubr.msk.f32.mxu0 %vm35_vm2, %v3834_v62  ;;  %v2387_v24 = vld [vmem:[%s4530_s3 + $0xb0] sm:$0xff] }
  0xa3   :  { %3239 = vmatprep.subr.bf16.mxu0 %v3238_v36 }
  0xa5   :  { %2804 = vmatmul.mubr.msk.f32.gmra.mrb[2].mxu0 %vm35_vm2, %v3832_v60 }
  0xa6   :  { %2806 = vmatprep.mubr.msk.f32.mxu0 %vm35_vm2, %v3849_v4  ;;  %3241 = vmatpush3.bf16.msra.mxu0 %v3238_v36 }
  0xa7   :  { %3243 = vmatprep.subr.bf16.mxu0 %v3242_v39 }
  0xa9   :  { %2807 = vmatmul.mubr.msk.f32.gmra.mrb[4].mxu0 %vm35_vm2, %v3851_v8 }
  0xaa   :  { %2809 = vmatprep.mubr.msk.f32.mxu0 %vm35_vm2, %v3865_v11  ;;  %3245 = vmatpush3.bf16.msra.mxu0 %v3242_v39 }
  0xab   :  { %3247 = vmatprep.subr.bf16.mxu0 %v3246_v42 }
  0xad   :  { %2810 = vmatmul.mubr.msk.f32.gmra.mrb[6].mxu0 %vm35_vm2, %v3867_v15 }
  0xae   :  { %2812 = vmatprep.mubr.msk.f32.mxu0 %vm35_vm2, %v3875_v16  ;;  %3249 = vmatpush3.bf16.msra.mxu0 %v3246_v42  ;;  %v3298_v42 = vpack.c.bf16 %v2390_v35, %v2389_v34 }
  0xaf   :  { %2840 = vmatprep.subr.mxu0 %v2363_v43 }
  0xb1   :  { %2813 = vmatmul.mubr.msk.f32.gmra.mrb[8].mxu0 %vm35_vm2, %v3880_v20 }
  0xb2   :  { %2815 = vmatprep.mubr.msk.f32.mxu0 %vm35_vm2, %v3894_v23  ;;  %2841 = vmatpush3.msra.mxu0 %v2363_v43 }
  0xb5   :  { %2816 = vmatmul.mubr.msk.f32.gmra.mrb[10].mxu0 %vm35_vm2, %v210_v27 }
  0xb6   :  { %2818 = vmatprep.mubr.msk.f32.mxu0 %vm35_vm2, %v211_v28 }
  0xb9   :  { %2819 = vmatmul.mubr.msk.f32.gmra.mrb[12].mxu0 %vm35_vm2, %v212_v29 }
  0xba   :  { %2821 = vmatprep.mubr.msk.f32.mxu0 %vm35_vm2, %v213_v30 }
  0xbd   :  { %2822 = vmatmul.mubr.msk.f32.gmra.mrb[14].mxu0 %vm35_vm2, %v214_v31 }
  0xbe   :  { %2842 = vmatprep.mubr.msk.f32.mxu0 %vm35_vm2, %v3834_v62 }
  0xc1   :  { %2843 = vmatmul.mubr.msk.f32.vlgmr.msra.gmra.mrb[0].mxu0 %vm35_vm2, %v3832_v60 }
  0xc2   :  { %2845 = vmatprep.mubr.msk.f32.mxu0 %vm35_vm2, %v3849_v4  ;;  %v2383_v4 = vld [vmem:[%s4530_s3 + $0x90] sm:$0xff] }
  0xc3   :  { %v3286_v12 = vpack.c.bf16 %v2384_v5, %v2383_v4  ;;  %v2396_v4 = vld [vmem:[%s4530_s3 + $0xf8] sm:$0xff] }
  0xc5   :  { %2846 = vmatmul.mubr.msk.f32.gmra.mrb[2].mxu0 %vm35_vm2, %v3851_v8 }
  0xc6   :  { %2848 = vmatprep.mubr.msk.f32.mxu0 %vm35_vm2, %v3865_v11 }
  0xc9   :  { %2849 = vmatmul.mubr.msk.f32.gmra.mrb[4].mxu0 %vm35_vm2, %v3867_v15  ;;  %v2386_v15 = vld [vmem:[%s4530_s3 + $0xa8] sm:$0xff] }
  0xca   :  { %2851 = vmatprep.mubr.msk.f32.mxu0 %vm35_vm2, %v3875_v16  ;;  %v3290_v22 = vpack.c.bf16 %v2386_v15, %v2385_v14 }
  0xcd   :  { %2852 = vmatmul.mubr.msk.f32.gmra.mrb[6].mxu0 %vm35_vm2, %v3880_v20 }
  0xce   :  { %2854 = vmatprep.mubr.msk.f32.mxu0 %vm35_vm2, %v3894_v23 }
  0xd1   :  { %2855 = vmatmul.mubr.msk.f32.gmra.mrb[8].mxu0 %vm35_vm2, %v210_v27 }
  0xd2   :  { %2857 = vmatprep.mubr.msk.f32.mxu0 %vm35_vm2, %v211_v28 }
  0xd5   :  { %2858 = vmatmul.mubr.msk.f32.gmra.mrb[10].mxu0 %vm35_vm2, %v212_v29 }
  0xd6   :  { %2860 = vmatprep.mubr.msk.f32.mxu0 %vm35_vm2, %v213_v30 }
  0xd9   :  { %2861 = vmatmul.mubr.msk.f32.gmra.mrb[12].mxu0 %vm35_vm2, %v214_v31 }
  0xda   :  { %2863 = vmatprep.mubr.msk.f32.mxu0 %vm35_vm2, %v215_v32  ;;  %v3294_v32 = vpack.c.bf16 %v2388_v25, %v2387_v24  ;;  %v2405_v25 = vld [vmem:[%s4532_s4 + $0x90] sm:$0xff] }
  0xdd   :  { %2864 = vmatmul.mubr.msk.f32.gmra.mrb[14].mxu0 %vm35_vm2, %v628_v44  ;;  %v2391_v44 = vld [vmem:[%s4530_s3 + $0xd0] sm:$0xff] }
  0xde   :  { %v3302_v52 = vpack.c.bf16 %v2392_v45, %v2391_v44 }
 0x194   :  { %v2844_v55 = vpop.f32.mrb[0].mxu0 }
 0x195   :  { %v856_v56 = vadd.f32 %v2844_v55, %v3999_v54  ;;  %v753_v57 = vpop.f32.mrb[1].mxu0  ;;  %v2393_v55 = vld [vmem:[%s4530_s3 + $0xe0] sm:$0xff] }
 0x196   :  { %v855_v58 = vadd.f32 %v3999_v54, %v753_v57 }
 0x197   :  { %v872_v59 = vmax.f32 %v856_v56, 0.0  ;;  %v2394_v56 = vld [vmem:[%s4530_s3 + $0xe8] sm:$0xff] }
 0x198   :  { %v871_v60 = vmax.f32 %v855_v58, 0.0  ;;  %v2847_v61 = vpop.f32.mrb[2].mxu0 }
 0x199   :  { %v858_v62 = vadd.f32 %v2847_v61, %v3999_v54  ;;  %v763_v63 = vpop.f32.mrb[3].mxu0 }
 0x19a   :  { %v857_v0 = vadd.f32 %v3999_v54, %v763_v63  ;;  %v4005_v1 = vmax.f32 %v871_v60, %v872_v59  ;;  %v3306_v63 = vpack.c.bf16 %v2394_v56, %v2393_v55  ;;  %v1756_v55 = vld [vmem:[%s4534_s6 + $0x20] sm:$0xff]  ;;  %v1757_v56 = vld [vmem:[%s4534_s6 + $0x28] sm:$0xff] }
 0x19b   :  { %v874_v3 = vmax.f32 %v858_v62, 0.0 }
 0x19c   :  { %v873_v6 = vmax.f32 %v857_v0, 0.0  ;;  %v2850_v7 = vpop.f32.mrb[4].mxu0  ;;  %2898 = vmatprep.mubr.f32.mxu1 %v4005_v1 }
 0x19d   :  { %v860_v8 = vadd.f32 %v2850_v7, %v3999_v54  ;;  %v773_v9 = vpop.f32.mrb[5].mxu0 }
 0x19e   :  { %v4015_v10 = vmax.f32 %v873_v6, %v874_v3  ;;  %v859_v11 = vadd.f32 %v3999_v54, %v773_v9  ;;  %v2395_v3 = vld [vmem:[%s4530_s3 + $0xf0] sm:$0xff] }
 0x19f   :  { %v876_v13 = vmax.f32 %v860_v8, 0.0  ;;  %v3310_v7 = vpack.c.bf16 %v2396_v4, %v2395_v3  ;;  %v2399_v8 = vld [vmem:[%s4532_s4 + $0x60] sm:$0xff]  ;;  %v1763_v3 = vld [vmem:[%s4534_s6 + $0x58] sm:$0xff] }
 0x1a0   :  { %v875_v16 = vmax.f32 %v859_v11, 0.0  ;;  %v2853_v17 = vpop.f32.mrb[6].mxu0  ;;  %2899 = vmatmul.mubr.f32.vlgmr.msra.gmra.mrb[0].mxu1 %v4015_v10 }
 0x1a1   :  { %v862_v18 = vadd.f32 %v2853_v17, %v3999_v54  ;;  %3285 = vmatpush3.bf16.msra.mxu1 %v3282_v53  ;;  %v783_v19 = vpop.f32.mrb[7].mxu0 }
 0x1a2   :  { %v4026_v20 = vmax.f32 %v875_v16, %v876_v13  ;;  %v861_v21 = vadd.f32 %v3999_v54, %v783_v19  ;;  %3287 = vmatprep.subr.bf16.mxu1 %v3286_v12  ;;  %v2402_v13 = vld [vmem:[%s4532_s4 + $0x78] sm:$0xff] }
 0x1a3   :  { %v878_v23 = vmax.f32 %v862_v18, 0.0 }
 0x1a4   :  { %v877_v26 = vmax.f32 %v861_v21, 0.0  ;;  %v2856_v27 = vpop.f32.mrb[8].mxu0  ;;  %2901 = vmatprep.mubr.f32.mxu1 %v4026_v20  ;;  %v2403_v21 = vld [vmem:[%s4532_s4 + $0x80] sm:$0xff] }
 0x1a5   :  { %v864_v28 = vadd.f32 %v2856_v27, %v3999_v54  ;;  %3289 = vmatpush3.bf16.msra.mxu1 %v3286_v12  ;;  %v793_v29 = vpop.f32.mrb[9].mxu0  ;;  %v2401_v12 = vld [vmem:[%s4532_s4 + $0x70] sm:$0xff] }
 0x1a6   :  { %v923_v30 = vmax.f32 %v877_v26, %v878_v23  ;;  %v863_v31 = vadd.f32 %v3999_v54, %v793_v29  ;;  %3291 = vmatprep.subr.bf16.mxu1 %v3290_v22  ;;  %v3322_v14 = vpack.c.bf16 %v2402_v13, %v2401_v12  ;;  %v2406_v26 = vld [vmem:[%s4532_s4 + $0x98] sm:$0xff]  ;;  %v1264_v29 = vld [vmem:[%s4532_s4] sm:$0xff] }
 0x1a7   :  { %v880_v33 = vmax.f32 %v864_v28, 0.0  ;;  %v3330_v28 = vpack.c.bf16 %v2406_v26, %v2405_v25  ;;  %v1272_v26 = vld [vmem:[%s4532_s4 + $0x40] sm:$0xff] }
 0x1a8   :  { %v879_v36 = vmax.f32 %v863_v31, 0.0  ;;  %v2859_v37 = vpop.f32.mrb[10].mxu0  ;;  %2902 = vmatmul.mubr.f32.gmra.mrb[2].mxu1 %v923_v30 }
 0x1a9   :  { %v866_v38 = vadd.f32 %v2859_v37, %v3999_v54  ;;  %3293 = vmatpush3.bf16.msra.mxu1 %v3290_v22  ;;  %v803_v39 = vpop.f32.mrb[11].mxu0  ;;  %v2404_v22 = vld [vmem:[%s4532_s4 + $0x88] sm:$0xff] }
 0x1aa   :  { %v924_v40 = vmax.f32 %v879_v36, %v880_v33  ;;  %v865_v41 = vadd.f32 %v3999_v54, %v803_v39  ;;  %3295 = vmatprep.subr.bf16.mxu1 %v3294_v32  ;;  %v3326_v23 = vpack.c.bf16 %v2404_v22, %v2403_v21  ;;  %v1270_v21 = vld [vmem:[%s4532_s4 + $0x30] sm:$0xff]  ;;  %v1271_v22 = vld [vmem:[%s4532_s4 + $0x38] sm:$0xff] }
 0x1ab   :  { %v882_v43 = vmax.f32 %v866_v38, 0.0 }
 0x1ac   :  { %v881_v46 = vmax.f32 %v865_v41, 0.0  ;;  %v2862_v47 = vpop.f32.mrb[12].mxu0  ;;  %2904 = vmatprep.mubr.f32.mxu1 %v924_v40 }
 0x1ad   :  { %v868_v48 = vadd.f32 %v2862_v47, %v3999_v54  ;;  %3297 = vmatpush3.bf16.msra.mxu1 %v3294_v32  ;;  %v813_v49 = vpop.f32.mrb[13].mxu0 }
 0x1ae   :  { %v925_v50 = vmax.f32 %v881_v46, %v882_v43  ;;  %v867_v51 = vadd.f32 %v3999_v54, %v813_v49  ;;  %3299 = vmatprep.subr.bf16.mxu1 %v3298_v42  ;;  %v1753_v49 = vld [vmem:[%s4534_s6 + $0x8] sm:$0xff] }
 0x1af   :  { %v884_v53 = vmax.f32 %v868_v48, 0.0  ;;  %v1752_v48 = vld [vmem:[%s4534_s6] sm:$0xff] }
 0x1b0   :  { %v883_v57 = vmax.f32 %v867_v51, 0.0  ;;  %v2865_v58 = vpop.f32.mrb[14].mxu0  ;;  %2905 = vmatmul.mubr.f32.gmra.mrb[4].mxu1 %v925_v50  ;;  %v3374_v51 = vpack.c.bf16 %v1753_v49, %v1752_v48  ;;  %v1764_v48 = vld [vmem:[%s4534_s6 + $0x60] sm:$0xff]  ;;  %v1765_v49 = vld [vmem:[%s4534_s6 + $0x68] sm:$0xff] }
 0x1b1   :  { %v870_v59 = vadd.f32 %v2865_v58, %v3999_v54  ;;  %3301 = vmatpush3.bf16.msra.mxu1 %v3298_v42  ;;  %v823_v60 = vpop.f32.mrb[15].mxu0  ;;  %v1758_v58 = vld [vmem:[%s4534_s6 + $0x30] sm:$0xff] }
 0x1b2   :  { %v926_v61 = vmax.f32 %v883_v57, %v884_v53  ;;  %v869_v62 = vadd.f32 %v3999_v54, %v823_v60  ;;  %3303 = vmatprep.subr.bf16.mxu1 %v3302_v52  ;;  %v2397_v54 = vld [vmem:[%s4532_s4 + $0x50] sm:$0xff]  ;;  %3375 = vmatprep.subr.bf16.mxu0 %v3374_v51  ;;  %v3382_v57 = vpack.c.bf16 %v1757_v56, %v1756_v55  ;;  %v2442_v55 = vld [vmem:[%s4534_s6 + $0x80] sm:$0xff]  ;;  %v2443_v56 = vld [vmem:[%s4534_s6 + $0x88] sm:$0xff] }
 0x1b3   :  { %v886_v0 = vmax.f32 %v870_v59, 0.0  ;;  %3377 = vmatpush3.bf16.msra.mxu0 %v3374_v51  ;;  %v1759_v59 = vld [vmem:[%s4534_s6 + $0x38] sm:$0xff]  ;;  %v1766_v51 = vld [vmem:[%s4534_s6 + $0x70] sm:$0xff] }
 0x1b4   :  { %v885_v5 = vmax.f32 %v869_v62, 0.0  ;;  %2907 = vmatprep.mubr.f32.mxu1 %v926_v61  ;;  %v3386_v60 = vpack.c.bf16 %v1759_v59, %v1758_v58  ;;  %v1761_v62 = vld [vmem:[%s4534_s6 + $0x48] sm:$0xff]  ;;  %v2441_v58 = vld [vmem:[%s4535_s5] ss:$0 sm:$0xff] }
 0x1b5   :  { %3305 = vmatpush3.bf16.msra.mxu1 %v3302_v52  ;;  %v1755_v52 = vld [vmem:[%s4534_s6 + $0x18] sm:$0xff] }
 0x1b6   :  { %v927_v6 = vmax.f32 %v885_v5, %v886_v0  ;;  %3307 = vmatprep.subr.bf16.mxu1 %v3306_v63  ;;  %v1762_v0 = vld [vmem:[%s4534_s6 + $0x50] sm:$0xff] }
 0x1b7   :  { %v3394_v4 = vpack.c.bf16 %v1763_v3, %v1762_v0 }
 0x1b8   :  { %2908 = vmatmul.mubr.f32.gmra.mrb[6].mxu1 %v927_v6 }
 0x1b9   :  { %3309 = vmatpush3.bf16.msra.mxu1 %v3306_v63  ;;  %2942 = vmatprep.mubr.f32.mxu1 %v4005_v1  ;;  %v2398_v1 = vld [vmem:[%s4532_s4 + $0x58] sm:$0xff] }
 0x1ba   :  { %3311 = vmatprep.subr.bf16.mxu1 %v3310_v7  ;;  %v3314_v9 = vpack.c.bf16 %v2398_v1, %v2397_v54  ;;  %v1266_v1 = vld [vmem:[%s4532_s4 + $0x10] sm:$0xff] }
 0x1bd   :  { %3313 = vmatpush3.bf16.msra.mxu1 %v3310_v7 }
 0x1be   :  { %3315 = vmatprep.subr.bf16.mxu1 %v3314_v9 }
 0x1c0   :  { %2943 = vmatmul.mubr.f32.vlgmr.msra.gmra.mrb[8].mxu1 %v4015_v10  ;;  %v2400_v10 = vld [vmem:[%s4532_s4 + $0x68] sm:$0xff] }
 0x1c1   :  { %2945 = vmatprep.mubr.f32.mxu1 %v4026_v20  ;;  %v3318_v11 = vpack.c.bf16 %v2400_v10, %v2399_v8  ;;  %3317 = vmatpush3.bf16.msra.mxu1 %v3314_v9  ;;  %v1267_v8 = vld [vmem:[%s4532_s4 + $0x18] sm:$0xff] }
 0x1c2   :  { %v3338_v12 = vpack.c.bf16 %v1267_v8, %v1266_v1  ;;  %v2444_v1 = vld [vmem:[%s4534_s6 + $0x90] sm:$0xff]  ;;  %v2445_v8 = vld [vmem:[%s4534_s6 + $0x98] sm:$0xff] }
 0x1c3   :  { %3319 = vmatprep.subr.bf16.mxu1 %v3318_v11 }
 0x1c4   :  { %2946 = vmatmul.mubr.f32.gmra.mrb[10].mxu1 %v923_v30  ;;  %v1265_v30 = vld [vmem:[%s4532_s4 + $0x8] sm:$0xff] }
 0x1c5   :  { %2948 = vmatprep.mubr.f32.mxu1 %v924_v40  ;;  %3321 = vmatpush3.bf16.msra.mxu1 %v3318_v11  ;;  %v4139_v31 = vpack.c.bf16 %v1265_v30, %v1264_v29  ;;  %v1256_v30 = vld [vmem:[#allocation4] sm:$0xff] }
 0x1c6   :  { %3323 = vmatprep.subr.bf16.mxu1 %v3322_v14 }
 0x1c8   :  { %2949 = vmatmul.mubr.f32.gmra.mrb[12].mxu1 %v925_v50  ;;  %v1754_v50 = vld [vmem:[%s4534_s6 + $0x10] sm:$0xff] }
 0x1c9   :  { %2951 = vmatprep.mubr.f32.mxu1 %v926_v61  ;;  %3325 = vmatpush3.bf16.msra.mxu1 %v3322_v14  ;;  %v3378_v53 = vpack.c.bf16 %v1755_v52, %v1754_v50  ;;  %v1760_v61 = vld [vmem:[%s4534_s6 + $0x40] sm:$0xff]  ;;  %v3398_v50 = vpack.c.bf16 %v1765_v49, %v1764_v48  ;;  %v1767_v52 = vld [vmem:[%s4534_s6 + $0x78] sm:$0xff] }
 0x1ca   :  { %3327 = vmatprep.subr.bf16.mxu1 %v3326_v23  ;;  %v3390_v63 = vpack.c.bf16 %v1761_v62, %v1760_v61  ;;  %v1268_v14 = vld [vmem:[%s4532_s4 + $0x20] sm:$0xff]  ;;  %v2461_v49 = vld [vmem:[%s4536_s7 + $0x58] sm:$0xff] }
 0x1cb   :  { %3379 = vmatprep.subr.bf16.mxu0 %v3378_v53 }
 0x1cc   :  { %2952 = vmatmul.mubr.f32.gmra.mrb[14].mxu1 %v927_v6  ;;  %3381 = vmatpush3.bf16.msra.mxu0 %v3378_v53  ;;  %v3402_v53 = vpack.c.bf16 %v1767_v52, %v1766_v51  ;;  %v2469_v51 = vld [vmem:[%s4536_s7 + $0x88] sm:$0xff] }
 0x1cd   :  { %3329 = vmatpush3.bf16.msra.mxu1 %v3326_v23  ;;  %3383 = vmatprep.subr.bf16.mxu0 %v3382_v57 }
 0x1ce   :  { %3331 = vmatprep.subr.bf16.mxu1 %v3330_v28 }
 0x1d0   :  { %3385 = vmatpush3.bf16.msra.mxu0 %v3382_v57  ;;  %v3406_v57 = vpack.c.bf16 %v2443_v56, %v2442_v55  ;;  %v2471_v56 = vld [vmem:[%s4536_s7 + $0x98] sm:$0xff] }
 0x1d1   :  { %3333 = vmatpush3.bf16.msra.mxu1 %v3330_v28  ;;  %3387 = vmatprep.subr.bf16.mxu0 %v3386_v60 }
 0x1d2   :  { %3335 = vmatprep.subr.bf16.mxu1 %v4139_v31 }
 0x1d4   :  { %3389 = vmatpush3.bf16.msra.mxu0 %v3386_v60 }
 0x1d5   :  { %3391 = vmatprep.subr.bf16.mxu0 %v3390_v63 }
 0x1d8   :  { %3393 = vmatpush3.bf16.msra.mxu0 %v3390_v63 }
 0x1d9   :  { %3395 = vmatprep.subr.bf16.mxu0 %v3394_v4 }
 0x1dc   :  { %3397 = vmatpush3.bf16.msra.mxu0 %v3394_v4 }
 0x1dd   :  { %3399 = vmatprep.subr.bf16.mxu0 %v3398_v50 }
 0x1e0   :  { %3401 = vmatpush3.bf16.msra.mxu0 %v3398_v50  ;;  %v2468_v50 = vld [vmem:[%s4536_s7 + $0x80] sm:$0xff] }
 0x1e1   :  { %3403 = vmatprep.subr.bf16.mxu0 %v3402_v53  ;;  %v3463_v52 = vpack.c.bf16 %v2469_v51, %v2468_v50  ;;  %v2486_v51 = vld [vmem:[%s4538_s8] ss:$0 sm:$0xff] }
 0x1e4   :  { %3405 = vmatpush3.bf16.msra.mxu0 %v3402_v53  ;;  %v2470_v53 = vld [vmem:[%s4536_s7 + $0x90] sm:$0xff] }
 0x1e5   :  { %3407 = vmatprep.subr.bf16.mxu0 %v3406_v57 }
 0x273   :  { %v2900_v15 = vpop.f32.mrb[0].mxu1 }
 0x274   :  { %v1010_v16 = vpop.f32.mrb[1].mxu1 }
 0x27b   :  { %v2903_v17 = vpop.f32.mrb[2].mxu1 }
 0x27c   :  { %v1020_v18 = vpop.f32.mrb[3].mxu1 }
 0x283   :  { %v2906_v19 = vpop.f32.mrb[4].mxu1 }
 0x284   :  { %v1030_v20 = vpop.f32.mrb[5].mxu1 }
 0x28b   :  { %v2909_v24 = vpop.f32.mrb[6].mxu1 }
 0x28c   :  { %v1040_v27 = vpop.f32.mrb[7].mxu1 }
 0x293   :  { %v2944_v32 = vpop.f32.mrb[8].mxu1 }
 0x294   :  { %v1172_v33 = vmax.f32 %v2900_v15, %v2944_v32  ;;  %v1132_v34 = vpop.f32.mrb[9].mxu1  ;;  %v1269_v15 = vld [vmem:[%s4532_s4 + $0x28] sm:$0xff]  ;;  %v2423_v32 = vld [vmem:[%s4532_s4 + $0xa0] sm:$0xff] }
 0x295   :  { %v1171_v35 = vmax.f32 %v1010_v16, %v1132_v34 }
 0x296   :  { %1181 = vst.msk [vmem:[%s4533_s9 + $0x8] sm:$0xff] %vm1179_vm7, %v1172_v33  ;;  %1224 = vrot.lane.b32.xlu1 %v1172_v33, %s3541_s1  ;;  %v2424_v33 = vld [vmem:[%s4532_s4 + $0xa8] sm:$0xff] }
 0x297   :  { %1180 = vst.msk [vmem:[%s4533_s9] sm:$0xff] %vm1179_vm7, %v1171_v35  ;;  %1222 = vrot.lane.b32.xlu0 %v1171_v35, %s3541_s1  ;;  %v2947_v36 = vpop.f32.mrb[10].mxu1  ;;  %v3354_v34 = vpack.c.bf16 %v2424_v33, %v2423_v32  ;;  %v2425_v35 = vld [vmem:[%s4532_s4 + $0xb0] sm:$0xff]  ;;  %v2450_v32 = vld [vmem:[%s4534_s6 + $0xc0] sm:$0xff] }
 0x298   :  { %v1174_v37 = vmax.f32 %v2903_v17, %v2947_v36  ;;  %v1142_v38 = vpop.f32.mrb[11].mxu1  ;;  %v2426_v36 = vld [vmem:[%s4532_s4 + $0xb8] sm:$0xff]  ;;  %v2451_v33 = vld [vmem:[%s4534_s6 + $0xc8] sm:$0xff] }
 0x299   :  { %v1173_v39 = vmax.f32 %v1020_v18, %v1142_v38  ;;  %v2427_v38 = vld [vmem:[%s4532_s4 + $0xc0] sm:$0xff] }
 0x29a   :  { %1183 = vst.msk [vmem:[%s4533_s9 + $0x18] sm:$0xff] %vm1179_vm7, %v1174_v37  ;;  %1228 = vrot.lane.b32.xlu1 %v1174_v37, %s3541_s1  ;;  %v3358_v37 = vpack.c.bf16 %v2426_v36, %v2425_v35  ;;  %v2452_v35 = vld [vmem:[%s4534_s6 + $0xd0] sm:$0xff]  ;;  %v2453_v36 = vld [vmem:[%s4534_s6 + $0xd8] sm:$0xff] }
 0x29b   :  { %1182 = vst.msk [vmem:[%s4533_s9 + $0x10] sm:$0xff] %vm1179_vm7, %v1173_v39  ;;  %1226 = vrot.lane.b32.xlu0 %v1173_v39, %s3541_s1  ;;  %v2950_v40 = vpop.f32.mrb[12].mxu1  ;;  %v2428_v39 = vld [vmem:[%s4532_s4 + $0xc8] sm:$0xff] }
 0x29c   :  { %v1176_v41 = vmax.f32 %v2906_v19, %v2950_v40  ;;  %v1152_v42 = vpop.f32.mrb[13].mxu1  ;;  %v3342_v19 = vpack.c.bf16 %v1269_v15, %v1268_v14  ;;  %v3362_v40 = vpack.c.bf16 %v2428_v39, %v2427_v38  ;;  %v3410_v15 = vpack.c.bf16 %v2445_v8, %v2444_v1  ;;  %v2454_v38 = vld [vmem:[%s4534_s6 + $0xe0] sm:$0xff]  ;;  %v2455_v39 = vld [vmem:[%s4534_s6 + $0xe8] sm:$0xff] }
 0x29d   :  { %v1175_v43 = vmax.f32 %v1030_v20, %v1152_v42  ;;  %v2430_v42 = vld [vmem:[%s4532_s4 + $0xd8] sm:$0xff] }
 0x29e   :  { %1185 = vst.msk [vmem:[%s4533_s9 + $0x28] sm:$0xff] %vm1179_vm7, %v1176_v41  ;;  %1232 = vrot.lane.b32.xlu1 %v1176_v41, %s3541_s1  ;;  %v2429_v41 = vld [vmem:[%s4532_s4 + $0xd0] sm:$0xff] }
 0x29f   :  { %1184 = vst.msk [vmem:[%s4533_s9 + $0x20] sm:$0xff] %vm1179_vm7, %v1175_v43  ;;  %1230 = vrot.lane.b32.xlu0 %v1175_v43, %s3541_s1  ;;  %v2953_v44 = vpop.f32.mrb[14].mxu1  ;;  %v3366_v43 = vpack.c.bf16 %v2430_v42, %v2429_v41  ;;  %v2456_v41 = vld [vmem:[%s4534_s6 + $0xf0] sm:$0xff]  ;;  %v2457_v42 = vld [vmem:[%s4534_s6 + $0xf8] sm:$0xff] }
 0x2a0   :  { %v1178_v45 = vmax.f32 %v2909_v24, %v2953_v44  ;;  %v1162_v46 = vpop.f32.mrb[15].mxu1  ;;  %v3346_v24 = vpack.c.bf16 %v1271_v22, %v1270_v21  ;;  %v2431_v44 = vld [vmem:[%s4532_s4 + $0xe0] sm:$0xff] }
 0x2a1   :  { %v1177_v47 = vmax.f32 %v1040_v27, %v1162_v46  ;;  %v1273_v27 = vld [vmem:[%s4532_s4 + $0x48] sm:$0xff] }
 0x2a2   :  { %1187 = vst.msk [vmem:[%s4533_s9 + $0x38] sm:$0xff] %vm1179_vm7, %v1178_v45  ;;  %1236 = vrot.lane.b32.xlu1 %v1178_v45, %s3541_s1  ;;  %v3350_v29 = vpack.c.bf16 %v1273_v27, %v1272_v26  ;;  %v2432_v45 = vld [vmem:[%s4532_s4 + $0xe8] sm:$0xff]  ;;  %v2448_v27 = vld [vmem:[%s4534_s6 + $0xb0] sm:$0xff] }
 0x2a3   :  { %1186 = vst.msk [vmem:[%s4533_s9 + $0x30] sm:$0xff] %vm1179_vm7, %v1177_v47  ;;  %1234 = vrot.lane.b32.xlu0 %v1177_v47, %s3541_s1  ;;  %v3370_v46 = vpack.c.bf16 %v2432_v45, %v2431_v44  ;;  %v1559_v47 = vld [vmem:[#allocation4 + $0x48] sm:$0xff]  ;;  %v3542_v44 = vmov 0.0|0.0   ;;  %v2458_v45 = vld [vmem:[%s4536_s7 + $0x40] sm:$0xff] }
 0x308   :  { %v1225_v5 = vpop.permute.xlu1 %1224 }
 0x309   :  { %1249 = vst.msk [vmem:[#allocation4 + $0x10] sm:$0xff] %vm1247_vm8, %v1225_v5  ;;  %v1223_v6 = vpop.permute.xlu0 %1222 }
 0x30a   :  { %1248 = vst.msk [vmem:[#allocation4 + $0x8] sm:$0xff] %vm1247_vm8, %v1223_v6 }
 0x30c   :  { %v1229_v7 = vpop.permute.xlu1 %1228 }
 0x30d   :  { %1251 = vst.msk [vmem:[#allocation4 + $0x20] sm:$0xff] %vm1247_vm8, %v1229_v7  ;;  %v1227_v54 = vpop.permute.xlu0 %1226 }
 0x30e   :  { %1250 = vst.msk [vmem:[#allocation4 + $0x18] sm:$0xff] %vm1247_vm8, %v1227_v54 }
 0x310   :  { %v1233_v9 = vpop.permute.xlu1 %1232  ;;  %v4235_v13 = vld [vmem:[#allocation4 + $0x10] sm:$0xff] }
 0x311   :  { %1253 = vst.msk [vmem:[#allocation4 + $0x30] sm:$0xff] %vm1247_vm8, %v1233_v9  ;;  %v1231_v10 = vpop.permute.xlu0 %1230  ;;  %v1274_v11 = vld [vmem:[#allocation4 + $0x8] sm:$0xff] }
 0x312   :  { %1252 = vst.msk [vmem:[#allocation4 + $0x28] sm:$0xff] %vm1247_vm8, %v1231_v10  ;;  %2974 = vmatprep.mubr.msk.f32.mxu1 %vm1188_vm6, %v1274_v11 }
 0x313   :  { %2975 = vmatmul.mubr.msk.f32.vlgmr.msra.gmra.mrb[16].mxu1 %vm1188_vm6, %v4235_v13 }
 0x314   :  { %3337 = vmatpush3.bf16.msra.mxu1 %v4139_v31  ;;  %v1237_v16 = vpop.permute.xlu1 %1236  ;;  %v1277_v20 = vld [vmem:[#allocation4 + $0x20] sm:$0xff] }
 0x315   :  { %1255 = vst.msk [vmem:[#allocation4 + $0x40] sm:$0xff] %vm1247_vm8, %v1237_v16  ;;  %v1235_v17 = vpop.permute.xlu0 %1234  ;;  %v4247_v18 = vld [vmem:[#allocation4 + $0x18] sm:$0xff]  ;;  %3339 = vmatprep.subr.bf16.mxu1 %v3338_v12 }
 0x316   :  { %1254 = vst.msk [vmem:[#allocation4 + $0x38] sm:$0xff] %vm1247_vm8, %v1235_v17  ;;  %2977 = vmatprep.mubr.msk.f32.mxu1 %vm1188_vm6, %v4247_v18  ;;  %v2446_v17 = vld [vmem:[%s4534_s6 + $0xa0] sm:$0xff] }
 0x317   :  { %2978 = vmatmul.mubr.msk.f32.gmra.mrb[18].mxu1 %vm1188_vm6, %v1277_v20 }
 0x318   :  { %3341 = vmatpush3.bf16.msra.mxu1 %v3338_v12  ;;  %v1279_v25 = vld [vmem:[#allocation4 + $0x30] sm:$0xff] }
 0x319   :  { %v1278_v23 = vld [vmem:[#allocation4 + $0x28] sm:$0xff]  ;;  %3343 = vmatprep.subr.bf16.mxu1 %v3342_v19 }
 0x31a   :  { %2980 = vmatprep.mubr.msk.f32.mxu1 %vm1188_vm6, %v1278_v23 }
 0x31b   :  { %2981 = vmatmul.mubr.msk.f32.gmra.mrb[20].mxu1 %vm1188_vm6, %v1279_v25 }
 0x31c   :  { %3345 = vmatpush3.bf16.msra.mxu1 %v3342_v19  ;;  %v1281_v31 = vld [vmem:[#allocation4 + $0x40] sm:$0xff] }
 0x31d   :  { %v1280_v28 = vld [vmem:[#allocation4 + $0x38] sm:$0xff]  ;;  %3347 = vmatprep.subr.bf16.mxu1 %v3346_v24 }
 0x31e   :  { %2983 = vmatprep.mubr.msk.f32.mxu1 %vm1188_vm6, %v1280_v28 }
 0x31f   :  { %2984 = vmatmul.mubr.msk.f32.gmra.mrb[22].mxu1 %vm1188_vm6, %v1281_v31 }
 0x320   :  { %3349 = vmatpush3.bf16.msra.mxu1 %v3346_v24  ;;  %3006 = vmatprep.mubr.msk.f32.mxu1 %vm1188_vm6, %v1256_v30 }
 0x321   :  { %3351 = vmatprep.subr.bf16.mxu1 %v3350_v29 }
 0x324   :  { %3353 = vmatpush3.bf16.msra.mxu1 %v3350_v29 }
 0x325   :  { %3355 = vmatprep.subr.bf16.mxu1 %v3354_v34 }
 0x327   :  { %3007 = vmatmul.mubr.msk.f32.vlgmr.msra.gmra.mrb[16].mxu1 %vm1188_vm6, %v1274_v11 }
 0x328   :  { %3009 = vmatprep.mubr.msk.f32.mxu1 %vm1188_vm6, %v4235_v13  ;;  %3357 = vmatpush3.bf16.msra.mxu1 %v3354_v34  ;;  %v3422_v34 = vpack.c.bf16 %v2451_v33, %v2450_v32  ;;  %v2479_v33 = vld [vmem:[%s4536_s7 + $0xd0] sm:$0xff] }
 0x329   :  { %3359 = vmatprep.subr.bf16.mxu1 %v3358_v37 }
 0x32b   :  { %3010 = vmatmul.mubr.msk.f32.gmra.mrb[18].mxu1 %vm1188_vm6, %v4247_v18 }
 0x32c   :  { %3012 = vmatprep.mubr.msk.f32.mxu1 %vm1188_vm6, %v1277_v20  ;;  %3361 = vmatpush3.bf16.msra.mxu1 %v3358_v37  ;;  %v3426_v37 = vpack.c.bf16 %v2453_v36, %v2452_v35  ;;  %v2481_v36 = vld [vmem:[%s4536_s7 + $0xe0] sm:$0xff] }
 0x32d   :  { %3363 = vmatprep.subr.bf16.mxu1 %v3362_v40 }
 0x32f   :  { %3013 = vmatmul.mubr.msk.f32.gmra.mrb[20].mxu1 %vm1188_vm6, %v1278_v23 }
 0x330   :  { %3015 = vmatprep.mubr.msk.f32.mxu1 %vm1188_vm6, %v1279_v25  ;;  %3365 = vmatpush3.bf16.msra.mxu1 %v3362_v40  ;;  %v3430_v40 = vpack.c.bf16 %v2455_v39, %v2454_v38  ;;  %v2483_v39 = vld [vmem:[%s4536_s7 + $0xf0] sm:$0xff] }
 0x331   :  { %3367 = vmatprep.subr.bf16.mxu1 %v3366_v43 }
 0x333   :  { %3016 = vmatmul.mubr.msk.f32.gmra.mrb[22].mxu1 %vm1188_vm6, %v1280_v28 }
 0x334   :  { %3369 = vmatpush3.bf16.msra.mxu1 %v3366_v43  ;;  %3038 = vmatprep.mubr.msk.f32.mxu1 %vm1188_vm6, %v4235_v13  ;;  %v3434_v43 = vpack.c.bf16 %v2457_v42, %v2456_v41 }
 0x335   :  { %3371 = vmatprep.subr.bf16.mxu1 %v3370_v46 }
 0x338   :  { %3373 = vmatpush3.bf16.msra.mxu1 %v3370_v46  ;;  %v2459_v46 = vld [vmem:[%s4536_s7 + $0x48] sm:$0xff] }
 0x339   :  { %3438 = vmatprep.subr.bf16.mxu1 %v3542_v44  ;;  %v3439_v48 = vpack.c.bf16 %v2459_v46, %v2458_v45 }
 0x33b   :  { %3039 = vmatmul.mubr.msk.f32.vlgmr.msra.gmra.mrb[16].mxu1 %vm1188_vm6, %v4247_v18  ;;  %v2447_v18 = vld [vmem:[%s4534_s6 + $0xa8] sm:$0xff] }
 0x33c   :  { %3041 = vmatprep.mubr.msk.f32.mxu1 %vm1188_vm6, %v1277_v20  ;;  %3440 = vmatpush3.bf16.msra.mxu1 %v3439_v48 }
 0x33d   :  { %3441 = vmatprep.subr.bf16.mxu1 %v3542_v44 }
 0x33f   :  { %3042 = vmatmul.mubr.msk.f32.gmra.mrb[18].mxu1 %vm1188_vm6, %v1278_v23 }
 0x340   :  { %3044 = vmatprep.mubr.msk.f32.mxu1 %vm1188_vm6, %v1279_v25  ;;  %v3414_v25 = vpack.c.bf16 %v2447_v18, %v2446_v17  ;;  %v1966_v17 = vld [vmem:[%s4536_s7 + $0x18] sm:$0xff] }
 0x343   :  { %3045 = vmatmul.mubr.msk.f32.gmra.mrb[20].mxu1 %vm1188_vm6, %v1280_v28  ;;  %v2449_v28 = vld [vmem:[%s4534_s6 + $0xb8] sm:$0xff] }
 0x344   :  { %3047 = vmatprep.mubr.msk.f32.mxu1 %vm1188_vm6, %v1281_v31  ;;  %v3418_v31 = vpack.c.bf16 %v2449_v28, %v2448_v27  ;;  %v1969_v27 = vld [vmem:[%s4536_s7 + $0x30] sm:$0xff]  ;;  %v1970_v28 = vld [vmem:[%s4536_s7 + $0x38] sm:$0xff] }
 0x347   :  { %3048 = vmatmul.mubr.msk.f32.gmra.mrb[22].mxu1 %vm1188_vm6, %v1559_v47  ;;  %v2460_v47 = vld [vmem:[%s4536_s7 + $0x50] sm:$0xff] }
 0x348   :  { %v3442_v55 = vpack.c.bf16 %v2461_v49, %v2460_v47  ;;  %3142 = vmatprep.mubr.msk.f32.mxu1 %vm3543_vm9, %v3539_v2 }
 0x34a   :  { %3443 = vmatpush3.bf16.msra.mxu1 %v3442_v55 }
 0x34b   :  { %3444 = vmatprep.subr.bf16.mxu1 %v3542_v44 }
 0x40e   :  { %v3040_v59 = vpop.f32.mrb[16].mxu1 }
 0x40f   :  { %v1716_v60 = vadd.f32 %v3040_v59, %v2441_v58  ;;  %v1661_v61 = vpop.f32.mrb[17].mxu1  ;;  %v3466_v59 = vpack.c.bf16 %v2471_v56, %v2470_v53 }
 0x410   :  { %v1715_v62 = vadd.f32 %v2441_v58, %v1661_v61  ;;  %v2464_v61 = vld [vmem:[%s4536_s7 + $0x70] sm:$0xff] }
 0x411   :  { %v1724_v63 = vmax.f32 %v1716_v60, 0.0 }
 0x412   :  { %v1723_v0 = vmax.f32 %v1715_v62, 0.0  ;;  %v3043_v3 = vpop.f32.mrb[18].mxu1  ;;  %v2465_v62 = vld [vmem:[%s4536_s7 + $0x78] sm:$0xff] }
 0x413   :  { %v1718_v4 = vadd.f32 %v3043_v3, %v2441_v58  ;;  %v1671_v5 = vpop.f32.mrb[19].mxu1  ;;  %v2473_v3 = vld [vmem:[%s4536_s7 + $0xa8] sm:$0xff] }
 0x414   :  { %v1748_v6 = vmax.f32 %v1723_v0, %v1724_v63  ;;  %v1717_v7 = vadd.f32 %v2441_v58, %v1671_v5  ;;  %v3448_v63 = vpack.c.bf16 %v2465_v62, %v2464_v61  ;;  %v2472_v0 = vld [vmem:[%s4536_s7 + $0xa0] sm:$0xff]  ;;  %v2474_v5 = vld [vmem:[%s4536_s7 + $0xb0] sm:$0xff] }
 0x415   :  { %v1726_v54 = vmax.f32 %v1718_v4, 0.0  ;;  %v3469_v4 = vpack.c.bf16 %v2473_v3, %v2472_v0 }
 0x416   :  { %v1725_v9 = vmax.f32 %v1717_v7, 0.0  ;;  %v3046_v10 = vpop.f32.mrb[20].mxu1  ;;  %3082 = vmatprep.mubr.f32.mxu0 %v1748_v6 }
 0x417   :  { %v1720_v11 = vadd.f32 %v3046_v10, %v2441_v58  ;;  %v1681_v12 = vpop.f32.mrb[21].mxu1  ;;  %v1963_v10 = vld [vmem:[%s4536_s7] sm:$0xff] }
 0x418   :  { %v1749_v13 = vmax.f32 %v1725_v9, %v1726_v54  ;;  %v1719_v14 = vadd.f32 %v2441_v58, %v1681_v12 }
 0x419   :  { %v1728_v16 = vmax.f32 %v1720_v11, 0.0  ;;  %v1964_v11 = vld [vmem:[%s4536_s7 + $0x8] sm:$0xff] }
 0x41a   :  { %v1727_v19 = vmax.f32 %v1719_v14, 0.0  ;;  %v3049_v20 = vpop.f32.mrb[22].mxu1  ;;  %3083 = vmatmul.mubr.f32.vlgmr.msra.gmra.mrb[16].mxu0 %v1749_v13 }
 0x41b   :  { %v1722_v21 = vadd.f32 %v3049_v20, %v2441_v58  ;;  %3409 = vmatpush3.bf16.msra.mxu0 %v3406_v57  ;;  %v1691_v22 = vpop.f32.mrb[23].mxu1  ;;  %v2462_v57 = vld [vmem:[%s4536_s7 + $0x60] sm:$0xff] }
 0x41c   :  { %v1750_v23 = vmax.f32 %v1727_v19, %v1728_v16  ;;  %v1721_v24 = vadd.f32 %v2441_v58, %v1691_v22  ;;  %3411 = vmatprep.subr.bf16.mxu0 %v3410_v15  ;;  %v2463_v58 = vld [vmem:[%s4536_s7 + $0x68] sm:$0xff]  ;;  %v1965_v16 = vld [vmem:[%s4536_s7 + $0x10] sm:$0xff] }
 0x41d   :  { %v1730_v26 = vmax.f32 %v1722_v21, 0.0  ;;  %v3445_v60 = vpack.c.bf16 %v2463_v58, %v2462_v57  ;;  %v3454_v20 = vpack.c.bf16 %v1966_v17, %v1965_v16 }
 0x41e   :  { %v1729_v29 = vmax.f32 %v1721_v24, 0.0  ;;  %3085 = vmatprep.mubr.f32.mxu0 %v1750_v23  ;;  %v1968_v24 = vld [vmem:[%s4536_s7 + $0x28] sm:$0xff] }
 0x41f   :  { %3413 = vmatpush3.bf16.msra.mxu0 %v3410_v15  ;;  %3446 = vmatpush3.bf16.msra.mxu1 %v3445_v60 }
 0x420   :  { %v1751_v30 = vmax.f32 %v1729_v29, %v1730_v26  ;;  %3415 = vmatprep.subr.bf16.mxu0 %v3414_v25  ;;  %3447 = vmatprep.subr.bf16.mxu1 %v3542_v44  ;;  %v3460_v29 = vpack.c.bf16 %v1970_v28, %v1969_v27 }
 0x422   :  { %3086 = vmatmul.mubr.f32.gmra.mrb[18].mxu0 %v1751_v30 }
 0x423   :  { %3417 = vmatpush3.bf16.msra.mxu0 %v3414_v25  ;;  %3120 = vmatprep.mubr.f32.mxu0 %v1748_v6  ;;  %v2475_v6 = vld [vmem:[%s4536_s7 + $0xb8] sm:$0xff] }
 0x424   :  { %3419 = vmatprep.subr.bf16.mxu0 %v3418_v31  ;;  %3449 = vmatpush3.bf16.msra.mxu1 %v3448_v63  ;;  %v3472_v7 = vpack.c.bf16 %v2475_v6, %v2474_v5 }
 0x425   :  { %3450 = vmatprep.subr.bf16.mxu1 %v3542_v44 }
 0x427   :  { %3421 = vmatpush3.bf16.msra.mxu0 %v3418_v31  ;;  %v2478_v31 = vld [vmem:[%s4536_s7 + $0xc8] sm:$0xff] }
 0x428   :  { %3423 = vmatprep.subr.bf16.mxu0 %v3422_v34 }
 0x42b   :  { %3425 = vmatpush3.bf16.msra.mxu0 %v3422_v34  ;;  %v2480_v34 = vld [vmem:[%s4536_s7 + $0xd8] sm:$0xff] }
 0x42c   :  { %3427 = vmatprep.subr.bf16.mxu0 %v3426_v37  ;;  %v3478_v35 = vpack.c.bf16 %v2480_v34, %v2479_v33 }
 0x42f   :  { %3429 = vmatpush3.bf16.msra.mxu0 %v3426_v37  ;;  %v2482_v37 = vld [vmem:[%s4536_s7 + $0xe8] sm:$0xff] }
 0x430   :  { %3431 = vmatprep.subr.bf16.mxu0 %v3430_v40  ;;  %v3481_v38 = vpack.c.bf16 %v2482_v37, %v2481_v36 }
 0x433   :  { %3433 = vmatpush3.bf16.msra.mxu0 %v3430_v40 }
 0x434   :  { %3435 = vmatprep.subr.bf16.mxu0 %v3434_v43 }
 0x437   :  { %3437 = vmatpush3.bf16.msra.mxu0 %v3434_v43 }
 0x438   :  { %3462 = vmatprep.subr.bf16.mxu0 %v3542_v44 }
 0x43a   :  { %3121 = vmatmul.mubr.f32.vlgmr.msra.gmra.mrb[20].mxu0 %v1749_v13  ;;  %v3451_v13 = vpack.c.bf16 %v1964_v11, %v1963_v10 }
 0x43b   :  { %3123 = vmatprep.mubr.f32.mxu0 %v1750_v23  ;;  %3464 = vmatpush3.bf16.msra.mxu0 %v3463_v52  ;;  %v1967_v23 = vld [vmem:[%s4536_s7 + $0x20] sm:$0xff] }
 0x43c   :  { %3465 = vmatprep.subr.bf16.mxu0 %v3542_v44  ;;  %v3457_v26 = vpack.c.bf16 %v1968_v24, %v1967_v23 }
 0x43e   :  { %3124 = vmatmul.mubr.f32.gmra.mrb[22].mxu0 %v1751_v30  ;;  %v2477_v30 = vld [vmem:[%s4536_s7 + $0xc0] sm:$0xff] }
 0x43f   :  { %3467 = vmatpush3.bf16.msra.mxu0 %v3466_v59  ;;  %3180 = vmatprep.mubr.msk.f32.mxu0 %vm3543_vm9, %v3539_v2  ;;  %v3475_v32 = vpack.c.bf16 %v2478_v31, %v2477_v30 }
 0x440   :  { %3468 = vmatprep.subr.bf16.mxu0 %v3542_v44 }
 0x443   :  { %3470 = vmatpush3.bf16.msra.mxu0 %v3469_v4 }
 0x444   :  { %3471 = vmatprep.subr.bf16.mxu0 %v3542_v44 }
 0x447   :  { %3473 = vmatpush3.bf16.msra.mxu0 %v3472_v7 }
 0x4ed   :  { %v3084_v54 = vpop.f32.mrb[16].mxu0 }
 0x4ee   :  { %v1834_v1 = vpop.f32.mrb[17].mxu0 }
 0x4f5   :  { %v3087_v8 = vpop.f32.mrb[18].mxu0 }
 0x4f6   :  { %v1844_v9 = vpop.f32.mrb[19].mxu0 }
 0x50d   :  { %v3122_v12 = vpop.f32.mrb[20].mxu0 }
 0x50e   :  { %v1956_v14 = vmax.f32 %v3084_v54, %v3122_v12  ;;  %v1936_v15 = vpop.f32.mrb[21].mxu0 }
 0x50f   :  { %v1955_v18 = vmax.f32 %v1834_v1, %v1936_v15 }
 0x510   :  { %1960 = vst.msk [vmem:[%s4537_s10 + $0x8] sm:$0xff] %vm1179_vm7, %v1956_v14  ;;  %3143 = vmatmul.mubr.msk.f32.vlgmr.msra.gmra.mrb[24].mxu1 %vm1179_vm7, %v1956_v14 }
 0x511   :  { %1959 = vst.msk [vmem:[%s4537_s10] sm:$0xff] %vm1179_vm7, %v1955_v18  ;;  %3452 = vmatpush3.bf16.msra.mxu1 %v3451_v13  ;;  %v3125_v19 = vpop.f32.mrb[22].mxu0  ;;  %3161 = vmatprep.mubr.msk.f32.mxu1 %vm3543_vm9, %v3539_v2 }
 0x512   :  { %v1958_v21 = vmax.f32 %v3087_v8, %v3125_v19  ;;  %v1946_v22 = vpop.f32.mrb[23].mxu0  ;;  %3453 = vmatprep.subr.bf16.mxu1 %v3542_v44 }
 0x513   :  { %v1957_v25 = vmax.f32 %v1844_v9, %v1946_v22 }
 0x514   :  { %1962 = vst.msk [vmem:[%s4537_s10 + $0x18] sm:$0xff] %vm1179_vm7, %v1958_v21 }
 0x515   :  { %1961 = vst.msk [vmem:[%s4537_s10 + $0x10] sm:$0xff] %vm1179_vm7, %v1957_v25  ;;  %3455 = vmatpush3.bf16.msra.mxu1 %v3454_v20  ;;  %3181 = vmatmul.mubr.msk.f32.vlgmr.msra.gmra.mrb[24].mxu0 %vm1179_vm7, %v1957_v25 }
 0x516   :  { %3456 = vmatprep.subr.bf16.mxu1 %v3542_v44 }
 0x519   :  { %3458 = vmatpush3.bf16.msra.mxu1 %v3457_v26 }
 0x51a   :  { %3459 = vmatprep.subr.bf16.mxu1 %v3542_v44 }
 0x51d   :  { %3461 = vmatpush3.bf16.msra.mxu1 %v3460_v29 }
 0x51e   :  { %3474 = vmatprep.subr.bf16.mxu1 %v3542_v44 }
 0x520   :  { %3162 = vmatmul.mubr.msk.f32.vlgmr.msra.gmra.mrb[26].mxu1 %vm1179_vm7, %v1955_v18 }
 0x521   :  { %3476 = vmatpush3.bf16.msra.mxu1 %v3475_v32  ;;  %3199 = vmatprep.mubr.msk.f32.mxu1 %vm3543_vm9, %v3539_v2  ;;  %v2484_v2 = vld [vmem:[%s4536_s7 + $0xf8] sm:$0xff] }
 0x522   :  { %3477 = vmatprep.subr.bf16.mxu1 %v3542_v44  ;;  %v3484_v40 = vpack.c.bf16 %v2484_v2, %v2483_v39 }
 0x525   :  { %3479 = vmatpush3.bf16.msra.mxu1 %v3478_v35 }
 0x526   :  { %3480 = vmatprep.subr.bf16.mxu1 %v3542_v44 }
 0x529   :  { %3482 = vmatpush3.bf16.msra.mxu1 %v3481_v38 }
 0x52a   :  { %3483 = vmatprep.subr.bf16.mxu1 %v3542_v44 }
 0x52d   :  { %3485 = vmatpush3.bf16.msra.mxu1 %v3484_v40 }
 0x530   :  { %3200 = vmatmul.mubr.msk.f32.vlgmr.msra.gmra.mrb[28].mxu1 %vm1179_vm7, %v1958_v21 }
 0x5e3   :  { %v2049_v41 = vpop.f32.mrb[24].mxu1 }
 0x5e4   :  { %v3144_v42 = vpop.f32.mrb[25].mxu1 }
 0x5e8   :  { %v2204_v43 = vpop.f32.mrb[24].mxu0 }
 0x5e9   :  { %v3182_v45 = vpop.f32.mrb[25].mxu0 }
 0x5f3   :  { %v2122_v46 = vpop.f32.mrb[26].mxu1 }
 0x5f4   :  { %v2123_v47 = vadd.f32 %v2122_v46, %v2049_v41  ;;  %v3163_v48 = vpop.f32.mrb[27].mxu1 }
 0x5f6   :  { %v2208_v49 = vadd.f32 %v2204_v43, %v2123_v47 }
 0x603   :  { %v2287_v50 = vpop.f32.mrb[28].mxu1 }
 0x604   :  { %v2291_v52 = vadd.f32 %v2287_v50, %v2208_v49  ;;  %v3201_v53 = vpop.f32.mrb[29].mxu1 }
 0x606   :  { %v2299_v44 = vadd.f32 %v2486_v51, %v2291_v52 }
 0x608   :  { %2301 = vst.msk [vmem:[%s4539_s11] sm:$0xff] %vm2300_vm10, %v2299_v44 }

</bundles_post_ra>
